<compile_context>
chip_gen: v7x
topology: tpu7x:2x2x1
jax: 0.10.0
libtpu: 0.0.40
codegen_flags: <defaults>
</compile_context>

<pallas_src>
import jax
import jax.numpy as jnp
from jax.experimental import pallas as pl
from jax.experimental.pallas import tpu as pltpu


# ------------------------------ Pallas kernel ------------------------------ #

def _attn_decoder_kernel(
    tok_ref, h0_ref, enc_ref, mask_ref,
    emb_fused_ref, w_attn_enc_ref, w_h_cat_ref, b_attn_ref, v_ref,
    w_ctx_cat_ref, b_ih_ref, b_hh_ref, w_out_h_ref, b_out_ref,
    pred_ref, h_out_ref, attn_w_ref,
    enc_proj_ref,
):
    t = pl.program_id(0)
    B, S, H = enc_ref.shape
    V = emb_fused_ref.shape[0]
    A = w_attn_enc_ref.shape[1]
    H3 = b_ih_ref.shape[1]                                    # 3*H

    # ---- step-0 setup: seed hidden carry, hoist step-invariant enc projection ----
    @pl.when(t == 0)
    def _():
        h_out_ref[...] = h0_ref[...]
        enc2d = enc_ref[...].reshape(B * S, H).astype(jnp.bfloat16)
        enc_proj_ref[...] = jnp.dot(
            enc2d, w_attn_enc_ref[...],
            preferred_element_type=jnp.float32).reshape(B, S, A)

    h = h_out_ref[...].astype(jnp.float32)                    # hidden carry (B, H)
    enc = enc_ref[...]                                        # (B, S, H) f32

    # ---- embedding folded into GRU input projection: onehot @ (emb @ W_ih_emb) ----
    # TODO(synk): out-of-range token ids silently yield a zero embedding row
    # (PyTorch nn.Embedding would raise).
    tok = tok_ref[0]                                          # (B, 1) int32
    vocab_ids = jax.lax.broadcasted_iota(jnp.int32, (B, V), 1)
    onehot = (vocab_ids == tok).astype(jnp.float32)           # (B, V)
    gi_emb = jnp.dot(onehot.astype(jnp.bfloat16), emb_fused_ref[...],
                     preferred_element_type=jnp.float32)      # (B, 3H)

    # ---- fused h-path matmul: h @ [W_attn_dec | W_hh] ----
    h_cat = jnp.dot(h.astype(jnp.bfloat16), w_h_cat_ref[...],
                    preferred_element_type=jnp.float32)       # (B, A + 3H)
    h_proj = h_cat[:, :A] + b_attn_ref[...]                   # (B, A)
    gh = h_cat[:, A:] + b_hh_ref[...]                         # (B, 3H)

    # ---- additive attention: tanh(enc_proj + h_proj) . v, masked softmax ----
    energy = jnp.tanh(enc_proj_ref[...] + h_proj[:, None, :])  # (B, S, A)
    scores = jnp.sum(energy * v_ref[...][None, :, :], axis=-1)  # (B, S)
    scores = jnp.where(mask_ref[...] != 0.0, scores, -1e10)
    m = jnp.max(scores, axis=-1, keepdims=True)
    e = jnp.exp(scores - m)
    attn_w = e / jnp.sum(e, axis=-1, keepdims=True)            # (B, S)
    attn_w_ref[0] = attn_w.astype(attn_w_ref.dtype)

    context = jnp.sum(attn_w[:, :, None] * enc, axis=1)        # (B, H)

    # ---- fused ctx-path matmul: context @ [W_ih_ctx | W_out_c] ----
    ctx_cat = jnp.dot(context.astype(jnp.bfloat16), w_ctx_cat_ref[...],
                      preferred_element_type=jnp.float32)      # (B, 3H + V)
    gi = gi_emb + ctx_cat[:, :H3] + b_ih_ref[...]              # (B, 3H)
    pred_ctx = ctx_cat[:, H3:]                                 # (B, V)

    # ---- GRU cell (PyTorch gate order [r | z | n]) ----
    r = jax.nn.sigmoid(gi[:, 0:H] + gh[:, 0:H])
    z = jax.nn.sigmoid(gi[:, H:2 * H] + gh[:, H:2 * H])
    n = jnp.tanh(gi[:, 2 * H:3 * H] + r * gh[:, 2 * H:3 * H])
    h_new = (1.0 - z) * n + z * h                              # (B, H)
    h_out_ref[...] = h_new.astype(h_out_ref.dtype)

    # ---- fc_out on cat([h_new, context]) ----
    pred = (jnp.dot(h_new.astype(jnp.bfloat16), w_out_h_ref[...],
                    preferred_element_type=jnp.float32)
            + pred_ctx + b_out_ref[...])                       # (B, V)
    pred_ref[0] = pred.astype(pred_ref.dtype)


# ------------------------------- wrappers ----------------------------------- #

@jax.jit
def attention_decoder_decode(packed, toks, hidden, encoder_outputs, mask):
    """Fused T-step decode (teacher forcing).

    toks:            (T, B)    int32 token ids, one per decode step
    hidden:          (1, B, H) float32 initial GRU hidden state (num_layers=1)
    encoder_outputs: (B, S, H) float32
    mask:            (B, S)    float32 (nonzero = attend, 0 = masked)
    returns (preds (T,B,V), hidden (1,B,H), attn_weights (T,B,S))
    """
    T, B = toks.shape
    _, S, H = encoder_outputs.shape
    A = packed["b_attn"].shape[1]
    V = packed["b_out"].shape[1]
    h0 = hidden[0]
    toks3d = toks.reshape(T, B, 1).astype(jnp.int32)

    const2 = lambda t: (0, 0)
    const3 = lambda t: (0, 0, 0)

    weight_args = (
        packed["emb_fused"], packed["w_attn_enc"], packed["w_h_cat"],
        packed["b_attn"], packed["v"], packed["w_ctx_cat"],
        packed["b_ih"], packed["b_hh"], packed["w_out_h"], packed["b_out"],
    )
    in_specs = (
        [pl.BlockSpec((1, B, 1), lambda t: (t, 0, 0)),   # token ids, per-step block
         pl.BlockSpec((B, H), const2),                   # initial hidden (read @ t=0)
         pl.BlockSpec((B, S, H), const3),                # encoder outputs, resident
         pl.BlockSpec((B, S), const2)]                   # mask, resident
        + [pl.BlockSpec(w.shape, const2) for w in weight_args]  # weights, resident
    )
    out_specs = (
        pl.BlockSpec((1, B, V), lambda t: (t, 0, 0)),    # per-step prediction
        pl.BlockSpec((B, H), const2),                    # hidden carry / final hidden
        pl.BlockSpec((1, B, S), lambda t: (t, 0, 0)),    # per-step attention weights
    )

    preds, h_final, attn_ws = pl.pallas_call(
        _attn_decoder_kernel,
        out_shape=(
            jax.ShapeDtypeStruct((T, B, V), jnp.float32),
            jax.ShapeDtypeStruct((B, H), jnp.float32),
            jax.ShapeDtypeStruct((T, B, S), jnp.float32),
        ),
        grid_spec=pltpu.PrefetchScalarGridSpec(
            num_scalar_prefetch=0,
            grid=(T,),
            in_specs=in_specs,
            out_specs=out_specs,
            scratch_shapes=[pltpu.VMEM((B, S, A), jnp.float32)],  # hoisted enc_proj
        ),
        compiler_params=pltpu.CompilerParams(
            dimension_semantics=("arbitrary",)),          # sequential hidden dep
    )(toks3d, h0, encoder_outputs, mask, *weight_args)
    return preds, h_final[None], attn_ws


def attention_decoder_step(packed, tok, hidden, encoder_outputs, mask):
    """One AttentionDecoder.forward() (T == 1)."""
    preds, h_new, attn_ws = attention_decoder_decode(
        packed, tok.reshape(1, -1), hidden, encoder_outputs, mask)
    return preds[0], h_new, attn_ws[0]


# ------------------------------ params / ref -------------------------------- #

def init_params(key, output_dim, emb_dim, hidden_dim, attn_dim):
    ks = jax.random.split(key, 13)
    s = 0.1

    def rn(k, shape):
        return s * jax.random.normal(k, shape, jnp.float32)

    return {
        "emb":        rn(ks[0], (output_dim, emb_dim)),
        # Attention: Linear(enc_dim + dec_dim, attn_dim), split at the concat.
        "w_attn_dec": rn(ks[1], (hidden_dim, attn_dim)),
        "w_attn_enc": rn(ks[2], (hidden_dim, attn_dim)),
        "b_attn":     rn(ks[3], (1, attn_dim)),
        "v":          rn(ks[4], (1, attn_dim)),     # Linear(attn_dim, 1, bias=False)
        # GRU over cat([embedded, context]); gate order [r|z|n].
        "w_ih_emb":   rn(ks[5], (emb_dim, 3 * hidden_dim)),
        "w_ih_ctx":   rn(ks[6], (hidden_dim, 3 * hidden_dim)),
        "w_hh":       rn(ks[7], (hidden_dim, 3 * hidden_dim)),
        "b_ih":       rn(ks[8], (1, 3 * hidden_dim)),
        "b_hh":       rn(ks[9], (1, 3 * hidden_dim)),
        # fc_out: Linear(2*hidden_dim, output_dim), split at the concat.
        "w_out_h":    rn(ks[10], (hidden_dim, output_dim)),
        "w_out_c":    rn(ks[11], (hidden_dim, output_dim)),
        "b_out":      rn(ks[12], (1, output_dim)),
    }


def pack_params(params):
    """One-time fold/concat/cast of weights for the kernel (bf16 MXU operands)."""
    bf = jnp.bfloat16
    return {
        # embedding folded into the GRU input projection (V, 3H)
        "emb_fused":  (params["emb"] @ params["w_ih_emb"]).astype(bf),
        "w_attn_enc": params["w_attn_enc"].astype(bf),
        # h-path: [W_attn_dec | W_hh]  (H, A + 3H)
        "w_h_cat":    jnp.concatenate(
            [params["w_attn_dec"], params["w_hh"]], axis=1).astype(bf),
        "b_attn":     params["b_attn"],
        "v":          params["v"],
        # ctx-path: [W_ih_ctx | W_out_c]  (H, 3H + V)
        "w_ctx_cat":  jnp.concatenate(
            [params["w_ih_ctx"], params["w_out_c"]], axis=1).astype(bf),
        "b_ih":       params["b_ih"],
        "b_hh":       params["b_hh"],
        "w_out_h":    params["w_out_h"].astype(bf),
        "b_out":      params["b_out"],
    }


def _ref_step(params, tok, h, encoder_outputs, mask):
    """Pure-JAX f32 reference for one step (same math as the PyTorch module)."""
    with jax.default_matmul_precision("float32"):
        B, S, H = encoder_outputs.shape
        embedded = jnp.take(params["emb"], tok, axis=0)
        h_proj = h @ params["w_attn_dec"] + params["b_attn"]
        enc_proj = jnp.einsum("bsh,ha->bsa", encoder_outputs, params["w_attn_enc"])
        energy = jnp.tanh(enc_proj + h_proj[:, None, :])
        scores = jnp.sum(energy * params["v"][None, :, :], axis=-1)
        scores = jnp.where(mask != 0.0, scores, -1e10)
        attn_w = jax.nn.softmax(scores, axis=1)
        context = jnp.einsum("bs,bsh->bh", attn_w, encoder_outputs)
        gi = (embedded @ params["w_ih_emb"] + context @ params["w_ih_ctx"]
              + params["b_ih"])
        gh = h @ params["w_hh"] + params["b_hh"]
        r = jax.nn.sigmoid(gi[:, :H] + gh[:, :H])
        z = jax.nn.sigmoid(gi[:, H:2 * H] + gh[:, H:2 * H])
        n = jnp.tanh(gi[:, 2 * H:] + r * gh[:, 2 * H:])
        h_new = (1.0 - z) * n + z * h
        pred = (h_new @ params["w_out_h"] + context @ params["w_out_c"]
                + params["b_out"])
        return pred, h_new, attn_w


def attention_decoder_ref_decode(params, toks, hidden, encoder_outputs, mask):
    h = hidden[0]
    preds, attns = [], []
    for t in range(toks.shape[0]):
        pred, h, attn = _ref_step(params, toks[t], h, encoder_outputs, mask)
        preds.append(pred)
        attns.append(attn)
    return jnp.stack(preds), h[None], jnp.stack(attns)


# ---------------------------------- main ------------------------------------ #

if __name__ == "__main__":
    # Lane/sublane-friendly small shapes (B mult of 8, H/A mult of 128, V=256).
    B, S, T = 8, 16, 8
    EMB, HID, ATTN = 32, 128, 128
    OUTPUT_DIM = 256
    NUM_LAYERS = 1

    key = jax.random.PRNGKey(0)
    kp, kt, kh, ke, kl = jax.random.split(key, 5)
    params = init_params(kp, OUTPUT_DIM, EMB, HID, ATTN)
    packed = pack_params(params)

    toks = jax.random.randint(kt, (T, B), 0, OUTPUT_DIM, dtype=jnp.int32)
    hidden = 0.1 * jax.random.normal(kh, (NUM_LAYERS, B, HID), jnp.float32)
    encoder_outputs = 0.1 * jax.random.normal(ke, (B, S, HID), jnp.float32)
    src_lens = jax.random.randint(kl, (B,), 4, S + 1, dtype=jnp.int32)
    mask = (jnp.arange(S)[None, :] < src_lens[:, None]).astype(jnp.float32)

    # fused T-step decode
    preds, h_final, attn_ws = attention_decoder_decode(
        packed, toks, hidden, encoder_outputs, mask)
    preds, h_final, attn_ws = jax.block_until_ready((preds, h_final, attn_ws))

    # shape / sanity checks
    assert preds.shape == (T, B, OUTPUT_DIM)
    assert h_final.shape == (NUM_LAYERS, B, HID)
    assert attn_ws.shape == (T, B, S)
    assert bool(jnp.all(jnp.isfinite(preds)))
    assert bool(jnp.allclose(jnp.sum(attn_ws, axis=-1), 1.0, atol=1e-4))
    # masked positions get (numerically) zero attention at every step
    assert bool(jnp.all(jnp.where(mask[None] == 0.0, attn_ws, 0.0) < 1e-6))

    # numerical check against the pure-JAX f32 reference loop
    preds_r, h_r, attn_r = attention_decoder_ref_decode(
        params, toks, hidden, encoder_outputs, mask)
    assert bool(jnp.allclose(preds, preds_r, rtol=2e-2, atol=2e-2))
    assert bool(jnp.allclose(h_final, h_r, rtol=2e-2, atol=2e-2))
    assert bool(jnp.allclose(attn_ws, attn_r, rtol=2e-2, atol=2e-2))

    # single-step API parity with AttentionDecoder.forward (T == 1)
    pred1, h1, w1 = attention_decoder_step(
        packed, toks[0], hidden, encoder_outputs, mask)
    pred1, h1, w1 = jax.block_until_ready((pred1, h1, w1))
    assert pred1.shape == (B, OUTPUT_DIM) and w1.shape == (B, S)
    assert bool(jnp.allclose(pred1, preds_r[0], rtol=2e-2, atol=2e-2))

    print("KERNEL_OK")
</pallas_src>

<mosaic_0001>
module attributes {stable_mosaic.version = 11 : i64} {
  func.func @_attn_decoder_kernel(%arg0: i32, %arg1: memref<1x8x1xi32, #tpu.memory_space<vmem>>, %arg2: memref<8x128xf32, #tpu.memory_space<vmem>>, %arg3: memref<8x16x128xf32, #tpu.memory_space<vmem>>, %arg4: memref<8x16xf32, #tpu.memory_space<vmem>>, %arg5: memref<256x384xbf16, #tpu.memory_space<vmem>>, %arg6: memref<128x128xbf16, #tpu.memory_space<vmem>>, %arg7: memref<128x512xbf16, #tpu.memory_space<vmem>>, %arg8: memref<1x128xf32, #tpu.memory_space<vmem>>, %arg9: memref<1x128xf32, #tpu.memory_space<vmem>>, %arg10: memref<128x640xbf16, #tpu.memory_space<vmem>>, %arg11: memref<1x384xf32, #tpu.memory_space<vmem>>, %arg12: memref<1x384xf32, #tpu.memory_space<vmem>>, %arg13: memref<128x256xbf16, #tpu.memory_space<vmem>>, %arg14: memref<1x256xf32, #tpu.memory_space<vmem>>, %arg15: memref<1x8x256xf32, #tpu.memory_space<vmem>>, %arg16: memref<8x128xf32, #tpu.memory_space<vmem>>, %arg17: memref<1x8x16xf32, #tpu.memory_space<vmem>>, %arg18: memref<8x16x128xf32, #tpu.memory_space<vmem>>) attributes {dimension_semantics = [#tpu.dimension_semantics<arbitrary>], iteration_bounds = array<i64: 8>, scalar_prefetch = 0 : i64, scratch_operands = 1 : i64, tpu.core_type = #tpu.core_type<tc>, window_params = [{transform_indices = @transform_0, window_bounds = array<i64: 1, 8, 1>}, {pipeline_mode = #tpu.pipeline_mode<synchronous>, transform_indices = @transform_1, window_bounds = array<i64: 8, 128>}, {pipeline_mode = #tpu.pipeline_mode<synchronous>, transform_indices = @transform_2, window_bounds = array<i64: 8, 16, 128>}, {pipeline_mode = #tpu.pipeline_mode<synchronous>, transform_indices = @transform_3, window_bounds = array<i64: 8, 16>}, {pipeline_mode = #tpu.pipeline_mode<synchronous>, transform_indices = @transform_4, window_bounds = array<i64: 256, 384>}, {pipeline_mode = #tpu.pipeline_mode<synchronous>, transform_indices = @transform_5, window_bounds = array<i64: 128, 128>}, {pipeline_mode = #tpu.pipeline_mode<synchronous>, transform_indices = @transform_6, window_bounds = array<i64: 128, 512>}, {pipeline_mode = #tpu.pipeline_mode<synchronous>, transform_indices = @transform_7, window_bounds = array<i64: 1, 128>}, {pipeline_mode = #tpu.pipeline_mode<synchronous>, transform_indices = @transform_8, window_bounds = array<i64: 1, 128>}, {pipeline_mode = #tpu.pipeline_mode<synchronous>, transform_indices = @transform_9, window_bounds = array<i64: 128, 640>}, {pipeline_mode = #tpu.pipeline_mode<synchronous>, transform_indices = @transform_10, window_bounds = array<i64: 1, 384>}, {pipeline_mode = #tpu.pipeline_mode<synchronous>, transform_indices = @transform_11, window_bounds = array<i64: 1, 384>}, {pipeline_mode = #tpu.pipeline_mode<synchronous>, transform_indices = @transform_12, window_bounds = array<i64: 128, 256>}, {pipeline_mode = #tpu.pipeline_mode<synchronous>, transform_indices = @transform_13, window_bounds = array<i64: 1, 256>}, {transform_indices = @transform_14, window_bounds = array<i64: 1, 8, 256>}, {pipeline_mode = #tpu.pipeline_mode<synchronous>, transform_indices = @transform_15, window_bounds = array<i64: 8, 128>}, {transform_indices = @transform_16, window_bounds = array<i64: 1, 8, 16>}]} {
    %c0_i32 = arith.constant 0 : i32
    %0 = arith.cmpi eq, %arg0, %c0_i32 : i32
    %1 = arith.extui %0 : i1 to i32
    %c0_i32_0 = arith.constant 0 : i32
    %2 = arith.cmpi ne, %1, %c0_i32_0 : i32
    scf.if %2 {
      %c0_51 = arith.constant 0 : index
      %c0_52 = arith.constant 0 : index
      %103 = vector.load %arg2[%c0_51, %c0_52] : memref<8x128xf32, #tpu.memory_space<vmem>>, vector<8x128xf32>
      %c0_53 = arith.constant 0 : index
      %c0_54 = arith.constant 0 : index
      %104 = vector.load %arg16[%c0_53, %c0_54] : memref<8x128xf32, #tpu.memory_space<vmem>>, vector<8x128xf32>
      tpu.vector_store %arg16[%c0_53, %c0_54], %103 {strides = array<i32>} : memref<8x128xf32, #tpu.memory_space<vmem>>, vector<8x128xf32>,
      %c0_55 = arith.constant 0 : index
      %c0_56 = arith.constant 0 : index
      %c0_57 = arith.constant 0 : index
      %105 = vector.load %arg3[%c0_55, %c0_56, %c0_57] : memref<8x16x128xf32, #tpu.memory_space<vmem>>, vector<8x16x128xf32>
      %106 = vector.shape_cast %105 : vector<8x16x128xf32> to vector<128x128xf32>
      %107 = arith.truncf %106 : vector<128x128xf32> to vector<128x128xbf16>
      %c0_58 = arith.constant 0 : index
      %c0_59 = arith.constant 0 : index
      %108 = vector.load %arg6[%c0_58, %c0_59] : memref<128x128xbf16, #tpu.memory_space<vmem>>, vector<128x128xbf16>
      %cst_60 = arith.constant dense<0.000000e+00> : vector<128x128xf32>
      %109 = tpu.matmul %107, %108, %cst_60 {dimension_numbers = #tpu.dot_dimension_numbers<[1], [0], [0], [1], [0, 0, 1, 1], [], []>} : vector<128x128xbf16>, vector<128x128xbf16>, vector<128x128xf32> -> vector<128x128xf32>
      %110 = vector.shape_cast %109 : vector<128x128xf32> to vector<8x16x128xf32>
      %c0_61 = arith.constant 0 : index
      %c0_62 = arith.constant 0 : index
      %c0_63 = arith.constant 0 : index
      %111 = vector.load %arg18[%c0_61, %c0_62, %c0_63] : memref<8x16x128xf32, #tpu.memory_space<vmem>>, vector<8x16x128xf32>
      tpu.vector_store %arg18[%c0_61, %c0_62, %c0_63], %110 {strides = array<i32>} : memref<8x16x128xf32, #tpu.memory_space<vmem>>, vector<8x16x128xf32>,
    } else {
    }
    %c0 = arith.constant 0 : index
    %c0_1 = arith.constant 0 : index
    %3 = vector.load %arg16[%c0, %c0_1] : memref<8x128xf32, #tpu.memory_space<vmem>>, vector<8x128xf32>
    %c0_2 = arith.constant 0 : index
    %c0_3 = arith.constant 0 : index
    %c0_4 = arith.constant 0 : index
    %4 = vector.load %arg3[%c0_2, %c0_3, %c0_4] : memref<8x16x128xf32, #tpu.memory_space<vmem>>, vector<8x16x128xf32>
    %c0_5 = arith.constant 0 : index
    %c0_6 = arith.constant 0 : index
    %c0_7 = arith.constant 0 : index
    %5 = vector.load %arg1[%c0_5, %c0_6, %c0_7] : memref<1x8x1xi32, #tpu.memory_space<vmem>>, vector<1x8x1xi32>
    %6 = vector.shape_cast %5 : vector<1x8x1xi32> to vector<8x1xi32>
    %7 = tpu.iota {dimensions = array<i32: 1>} : vector<8x256xi32>
    %8 = vector.broadcast %6 : vector<8x1xi32> to vector<8x256xi32>
    %9 = arith.cmpi eq, %7, %8 : vector<8x256xi32>
    %10 = arith.extui %9 : vector<8x256xi1> to vector<8x256xi32>
    %11 = arith.sitofp %10 : vector<8x256xi32> to vector<8x256xf32>
    %12 = arith.truncf %11 : vector<8x256xf32> to vector<8x256xbf16>
    %c0_8 = arith.constant 0 : index
    %c0_9 = arith.constant 0 : index
    %13 = vector.load %arg5[%c0_8, %c0_9] : memref<256x384xbf16, #tpu.memory_space<vmem>>, vector<256x384xbf16>
    %cst = arith.constant dense<0.000000e+00> : vector<8x384xf32>
    %14 = tpu.matmul %12, %13, %cst {dimension_numbers = #tpu.dot_dimension_numbers<[1], [0], [0], [1], [0, 0, 1, 1], [], []>} : vector<8x256xbf16>, vector<256x384xbf16>, vector<8x384xf32> -> vector<8x384xf32>
    %15 = arith.truncf %3 : vector<8x128xf32> to vector<8x128xbf16>
    %c0_10 = arith.constant 0 : index
    %c0_11 = arith.constant 0 : index
    %16 = vector.load %arg7[%c0_10, %c0_11] : memref<128x512xbf16, #tpu.memory_space<vmem>>, vector<128x512xbf16>
    %cst_12 = arith.constant dense<0.000000e+00> : vector<8x512xf32>
    %17 = tpu.matmul %15, %16, %cst_12 {dimension_numbers = #tpu.dot_dimension_numbers<[1], [0], [0], [1], [0, 0, 1, 1], [], []>} : vector<8x128xbf16>, vector<128x512xbf16>, vector<8x512xf32> -> vector<8x512xf32>
    %18 = vector.extract_strided_slice %17 {offsets = [0, 0], sizes = [8, 128], strides = [1, 1]} : vector<8x512xf32> to vector<8x128xf32>
    %c0_13 = arith.constant 0 : index
    %c0_14 = arith.constant 0 : index
    %19 = vector.load %arg8[%c0_13, %c0_14] : memref<1x128xf32, #tpu.memory_space<vmem>>, vector<1x128xf32>
    %20 = vector.broadcast %19 : vector<1x128xf32> to vector<8x128xf32>
    %21 = arith.addf %18, %20 : vector<8x128xf32>
    %22 = vector.extract_strided_slice %17 {offsets = [0, 128], sizes = [8, 384], strides = [1, 1]} : vector<8x512xf32> to vector<8x384xf32>
    %c0_15 = arith.constant 0 : index
    %c0_16 = arith.constant 0 : index
    %23 = vector.load %arg12[%c0_15, %c0_16] : memref<1x384xf32, #tpu.memory_space<vmem>>, vector<1x384xf32>
    %24 = vector.broadcast %23 : vector<1x384xf32> to vector<8x384xf32>
    %25 = arith.addf %22, %24 : vector<8x384xf32>
    %c0_17 = arith.constant 0 : index
    %c0_18 = arith.constant 0 : index
    %c0_19 = arith.constant 0 : index
    %26 = vector.load %arg18[%c0_17, %c0_18, %c0_19] : memref<8x16x128xf32, #tpu.memory_space<vmem>>, vector<8x16x128xf32>
    %27 = vector.shape_cast %21 : vector<8x128xf32> to vector<8x1x128xf32>
    %28 = vector.broadcast %27 : vector<8x1x128xf32> to vector<8x16x128xf32>
    %29 = arith.addf %26, %28 : vector<8x16x128xf32>
    %30 = math.tanh %29 : vector<8x16x128xf32>
    %c0_20 = arith.constant 0 : index
    %c0_21 = arith.constant 0 : index
    %31 = vector.load %arg9[%c0_20, %c0_21] : memref<1x128xf32, #tpu.memory_space<vmem>>, vector<1x128xf32>
    %32 = vector.shape_cast %31 : vector<1x128xf32> to vector<1x1x128xf32>
    %33 = vector.broadcast %32 : vector<1x1x128xf32> to vector<8x16x128xf32>
    %34 = arith.mulf %30, %33 : vector<8x16x128xf32>
    %cst_22 = arith.constant dense<0.000000e+00> : vector<8x16xf32>
    %35 = vector.multi_reduction <add>, %34, %cst_22 [2] : vector<8x16x128xf32> to vector<8x16xf32>
    %c0_23 = arith.constant 0 : index
    %c0_24 = arith.constant 0 : index
    %36 = vector.load %arg4[%c0_23, %c0_24] : memref<8x16xf32, #tpu.memory_space<vmem>>, vector<8x16xf32>
    %cst_25 = arith.constant 0.000000e+00 : f32
    %37 = vector.broadcast %cst_25 : f32 to vector<8x16xf32>
    %38 = arith.cmpf one, %36, %37 : vector<8x16xf32>
    %cst_26 = arith.constant -1.000000e+10 : f32
    %39 = vector.broadcast %cst_26 : f32 to vector<8x16xf32>
    %40 = arith.select %38, %35, %39 : vector<8x16xi1>, vector<8x16xf32>
    %cst_27 = arith.constant dense<0xFF800000> : vector<8xf32>
    %41 = vector.multi_reduction <maximumf>, %40, %cst_27 [1] : vector<8x16xf32> to vector<8xf32>
    %42 = vector.shape_cast %41 : vector<8xf32> to vector<8x1xf32>
    %43 = vector.broadcast %42 : vector<8x1xf32> to vector<8x16xf32>
    %44 = arith.subf %40, %43 : vector<8x16xf32>
    %45 = math.exp %44 : vector<8x16xf32>
    %cst_28 = arith.constant dense<0.000000e+00> : vector<8xf32>
    %46 = vector.multi_reduction <add>, %45, %cst_28 [1] : vector<8x16xf32> to vector<8xf32>
    %47 = vector.shape_cast %46 : vector<8xf32> to vector<8x1xf32>
    %48 = vector.broadcast %47 : vector<8x1xf32> to vector<8x16xf32>
    %49 = arith.divf %45, %48 : vector<8x16xf32>
    %c0_29 = arith.constant 0 : index
    %c0_30 = arith.constant 0 : index
    %c0_31 = arith.constant 0 : index
    %50 = vector.load %arg17[%c0_29, %c0_30, %c0_31] : memref<1x8x16xf32, #tpu.memory_space<vmem>>, vector<1x8x16xf32>
    %51 = vector.shape_cast %50 : vector<1x8x16xf32> to vector<8x16xf32>
    %52 = vector.shape_cast %49 : vector<8x16xf32> to vector<1x8x16xf32>
    tpu.vector_store %arg17[%c0_29, %c0_30, %c0_31], %52 {strides = array<i32>} : memref<1x8x16xf32, #tpu.memory_space<vmem>>, vector<1x8x16xf32>,
    %53 = vector.shape_cast %49 : vector<8x16xf32> to vector<8x16x1xf32>
    %54 = vector.broadcast %53 : vector<8x16x1xf32> to vector<8x16x128xf32>
    %55 = arith.mulf %54, %4 : vector<8x16x128xf32>
    %cst_32 = arith.constant dense<0.000000e+00> : vector<8x128xf32>
    %56 = vector.multi_reduction <add>, %55, %cst_32 [1] : vector<8x16x128xf32> to vector<8x128xf32>
    %57 = arith.truncf %56 : vector<8x128xf32> to vector<8x128xbf16>
    %c0_33 = arith.constant 0 : index
    %c0_34 = arith.constant 0 : index
    %58 = vector.load %arg10[%c0_33, %c0_34] : memref<128x640xbf16, #tpu.memory_space<vmem>>, vector<128x640xbf16>
    %cst_35 = arith.constant dense<0.000000e+00> : vector<8x640xf32>
    %59 = tpu.matmul %57, %58, %cst_35 {dimension_numbers = #tpu.dot_dimension_numbers<[1], [0], [0], [1], [0, 0, 1, 1], [], []>} : vector<8x128xbf16>, vector<128x640xbf16>, vector<8x640xf32> -> vector<8x640xf32>
    %60 = vector.extract_strided_slice %59 {offsets = [0, 0], sizes = [8, 384], strides = [1, 1]} : vector<8x640xf32> to vector<8x384xf32>
    %61 = arith.addf %14, %60 : vector<8x384xf32>
    %c0_36 = arith.constant 0 : index
    %c0_37 = arith.constant 0 : index
    %62 = vector.load %arg11[%c0_36, %c0_37] : memref<1x384xf32, #tpu.memory_space<vmem>>, vector<1x384xf32>
    %63 = vector.broadcast %62 : vector<1x384xf32> to vector<8x384xf32>
    %64 = arith.addf %61, %63 : vector<8x384xf32>
    %65 = vector.extract_strided_slice %59 {offsets = [0, 384], sizes = [8, 256], strides = [1, 1]} : vector<8x640xf32> to vector<8x256xf32>
    %66 = vector.extract_strided_slice %64 {offsets = [0, 0], sizes = [8, 128], strides = [1, 1]} : vector<8x384xf32> to vector<8x128xf32>
    %67 = vector.extract_strided_slice %25 {offsets = [0, 0], sizes = [8, 128], strides = [1, 1]} : vector<8x384xf32> to vector<8x128xf32>
    %68 = arith.addf %66, %67 : vector<8x128xf32>
    %69 = arith.negf %68 : vector<8x128xf32>
    %70 = math.exp %69 : vector<8x128xf32>
    %cst_38 = arith.constant 1.000000e+00 : f32
    %71 = vector.broadcast %cst_38 : f32 to vector<8x128xf32>
    %72 = arith.addf %71, %70 : vector<8x128xf32>
    %73 = arith.divf %71, %72 : vector<8x128xf32>
    %74 = vector.extract_strided_slice %64 {offsets = [0, 128], sizes = [8, 128], strides = [1, 1]} : vector<8x384xf32> to vector<8x128xf32>
    %75 = vector.extract_strided_slice %25 {offsets = [0, 128], sizes = [8, 128], strides = [1, 1]} : vector<8x384xf32> to vector<8x128xf32>
    %76 = arith.addf %74, %75 : vector<8x128xf32>
    %77 = arith.negf %76 : vector<8x128xf32>
    %78 = math.exp %77 : vector<8x128xf32>
    %cst_39 = arith.constant 1.000000e+00 : f32
    %79 = vector.broadcast %cst_39 : f32 to vector<8x128xf32>
    %80 = arith.addf %79, %78 : vector<8x128xf32>
    %81 = arith.divf %79, %80 : vector<8x128xf32>
    %82 = vector.extract_strided_slice %64 {offsets = [0, 256], sizes = [8, 128], strides = [1, 1]} : vector<8x384xf32> to vector<8x128xf32>
    %83 = vector.extract_strided_slice %25 {offsets = [0, 256], sizes = [8, 128], strides = [1, 1]} : vector<8x384xf32> to vector<8x128xf32>
    %84 = arith.mulf %73, %83 : vector<8x128xf32>
    %85 = arith.addf %82, %84 : vector<8x128xf32>
    %86 = math.tanh %85 : vector<8x128xf32>
    %cst_40 = arith.constant 1.000000e+00 : f32
    %87 = vector.broadcast %cst_40 : f32 to vector<8x128xf32>
    %88 = arith.subf %87, %81 : vector<8x128xf32>
    %89 = arith.mulf %88, %86 : vector<8x128xf32>
    %90 = arith.mulf %81, %3 : vector<8x128xf32>
    %91 = arith.addf %89, %90 : vector<8x128xf32>
    %c0_41 = arith.constant 0 : index
    %c0_42 = arith.constant 0 : index
    %92 = vector.load %arg16[%c0_41, %c0_42] : memref<8x128xf32, #tpu.memory_space<vmem>>, vector<8x128xf32>
    tpu.vector_store %arg16[%c0_41, %c0_42], %91 {strides = array<i32>} : memref<8x128xf32, #tpu.memory_space<vmem>>, vector<8x128xf32>,
    %93 = arith.truncf %91 : vector<8x128xf32> to vector<8x128xbf16>
    %c0_43 = arith.constant 0 : index
    %c0_44 = arith.constant 0 : index
    %94 = vector.load %arg13[%c0_43, %c0_44] : memref<128x256xbf16, #tpu.memory_space<vmem>>, vector<128x256xbf16>
    %cst_45 = arith.constant dense<0.000000e+00> : vector<8x256xf32>
    %95 = tpu.matmul %93, %94, %cst_45 {dimension_numbers = #tpu.dot_dimension_numbers<[1], [0], [0], [1], [0, 0, 1, 1], [], []>} : vector<8x128xbf16>, vector<128x256xbf16>, vector<8x256xf32> -> vector<8x256xf32>
    %96 = arith.addf %95, %65 : vector<8x256xf32>
    %c0_46 = arith.constant 0 : index
    %c0_47 = arith.constant 0 : index
    %97 = vector.load %arg14[%c0_46, %c0_47] : memref<1x256xf32, #tpu.memory_space<vmem>>, vector<1x256xf32>
    %98 = vector.broadcast %97 : vector<1x256xf32> to vector<8x256xf32>
    %99 = arith.addf %96, %98 : vector<8x256xf32>
    %c0_48 = arith.constant 0 : index
    %c0_49 = arith.constant 0 : index
    %c0_50 = arith.constant 0 : index
    %100 = vector.load %arg15[%c0_48, %c0_49, %c0_50] : memref<1x8x256xf32, #tpu.memory_space<vmem>>, vector<1x8x256xf32>
    %101 = vector.shape_cast %100 : vector<1x8x256xf32> to vector<8x256xf32>
    %102 = vector.shape_cast %99 : vector<8x256xf32> to vector<1x8x256xf32>
    tpu.vector_store %arg15[%c0_48, %c0_49, %c0_50], %102 {strides = array<i32>} : memref<1x8x256xf32, #tpu.memory_space<vmem>>, vector<1x8x256xf32>,
    return
  }
  func.func @transform_0(%arg0: i32) -> (i32, i32, i32) {
    %c0_i32 = arith.constant 0 : i32
    %c0_i32_0 = arith.constant 0 : i32
    %c0_i32_1 = arith.constant 0 : i32
    return %arg0, %c0_i32, %c0_i32_0 : i32, i32, i32
  }
  func.func @transform_1(%arg0: i32) -> (i32, i32) {
    %c0_i32 = arith.constant 0 : i32
    %c0_i32_0 = arith.constant 0 : i32
    %c0_i32_1 = arith.constant 0 : i32
    return %c0_i32, %c0_i32_0 : i32, i32
  }
  func.func @transform_2(%arg0: i32) -> (i32, i32, i32) {
    %c0_i32 = arith.constant 0 : i32
    %c0_i32_0 = arith.constant 0 : i32
    %c0_i32_1 = arith.constant 0 : i32
    %c0_i32_2 = arith.constant 0 : i32
    return %c0_i32, %c0_i32_0, %c0_i32_1 : i32, i32, i32
  }
  func.func @transform_3(%arg0: i32) -> (i32, i32) {
    %c0_i32 = arith.constant 0 : i32
    %c0_i32_0 = arith.constant 0 : i32
    %c0_i32_1 = arith.constant 0 : i32
    return %c0_i32, %c0_i32_0 : i32, i32
  }
  func.func @transform_4(%arg0: i32) -> (i32, i32) {
    %c0_i32 = arith.constant 0 : i32
    %c0_i32_0 = arith.constant 0 : i32
    %c0_i32_1 = arith.constant 0 : i32
    return %c0_i32, %c0_i32_0 : i32, i32
  }
  func.func @transform_5(%arg0: i32) -> (i32, i32) {
    %c0_i32 = arith.constant 0 : i32
    %c0_i32_0 = arith.constant 0 : i32
    %c0_i32_1 = arith.constant 0 : i32
    return %c0_i32, %c0_i32_0 : i32, i32
  }
  func.func @transform_6(%arg0: i32) -> (i32, i32) {
    %c0_i32 = arith.constant 0 : i32
    %c0_i32_0 = arith.constant 0 : i32
    %c0_i32_1 = arith.constant 0 : i32
    return %c0_i32, %c0_i32_0 : i32, i32
  }
  func.func @transform_7(%arg0: i32) -> (i32, i32) {
    %c0_i32 = arith.constant 0 : i32
    %c0_i32_0 = arith.constant 0 : i32
    %c0_i32_1 = arith.constant 0 : i32
    return %c0_i32, %c0_i32_0 : i32, i32
  }
  func.func @transform_8(%arg0: i32) -> (i32, i32) {
    %c0_i32 = arith.constant 0 : i32
    %c0_i32_0 = arith.constant 0 : i32
    %c0_i32_1 = arith.constant 0 : i32
    return %c0_i32, %c0_i32_0 : i32, i32
  }
  func.func @transform_9(%arg0: i32) -> (i32, i32) {
    %c0_i32 = arith.constant 0 : i32
    %c0_i32_0 = arith.constant 0 : i32
    %c0_i32_1 = arith.constant 0 : i32
    return %c0_i32, %c0_i32_0 : i32, i32
  }
  func.func @transform_10(%arg0: i32) -> (i32, i32) {
    %c0_i32 = arith.constant 0 : i32
    %c0_i32_0 = arith.constant 0 : i32
    %c0_i32_1 = arith.constant 0 : i32
    return %c0_i32, %c0_i32_0 : i32, i32
  }
  func.func @transform_11(%arg0: i32) -> (i32, i32) {
    %c0_i32 = arith.constant 0 : i32
    %c0_i32_0 = arith.constant 0 : i32
    %c0_i32_1 = arith.constant 0 : i32
    return %c0_i32, %c0_i32_0 : i32, i32
  }
  func.func @transform_12(%arg0: i32) -> (i32, i32) {
    %c0_i32 = arith.constant 0 : i32
    %c0_i32_0 = arith.constant 0 : i32
    %c0_i32_1 = arith.constant 0 : i32
    return %c0_i32, %c0_i32_0 : i32, i32
  }
  func.func @transform_13(%arg0: i32) -> (i32, i32) {
    %c0_i32 = arith.constant 0 : i32
    %c0_i32_0 = arith.constant 0 : i32
    %c0_i32_1 = arith.constant 0 : i32
    return %c0_i32, %c0_i32_0 : i32, i32
  }
  func.func @transform_14(%arg0: i32) -> (i32, i32, i32) {
    %c0_i32 = arith.constant 0 : i32
    %c0_i32_0 = arith.constant 0 : i32
    %c0_i32_1 = arith.constant 0 : i32
    return %arg0, %c0_i32, %c0_i32_0 : i32, i32, i32
  }
  func.func @transform_15(%arg0: i32) -> (i32, i32) {
    %c0_i32 = arith.constant 0 : i32
    %c0_i32_0 = arith.constant 0 : i32
    %c0_i32_1 = arith.constant 0 : i32
    return %c0_i32, %c0_i32_0 : i32, i32
  }
  func.func @transform_16(%arg0: i32) -> (i32, i32, i32) {
    %c0_i32 = arith.constant 0 : i32
    %c0_i32_0 = arith.constant 0 : i32
    %c0_i32_1 = arith.constant 0 : i32
    return %arg0, %c0_i32, %c0_i32_0 : i32, i32, i32
  }
}

</mosaic_0001>

<bundles_post_ra>
// kernel: attention_decoder_decode.1
= control target key start
LH: loop header
LB: loop body
LE: loop exit
PB: predicated region body
PF: predicated region fallthrough
CT: control target
= control target key end

     0   :  { %s4370_s0 = inlined_call_operand.vmem [shape: s32[8,8,1], index: 0, kind: input, shape index: {}]   ;;  %s4371_s1 = inlined_call_operand.vmem [shape: f32[8,128], index: 1, kind: input, shape index: {}]   ;;  %s4372_s2 = inlined_call_operand.hbm [shape: f32[8,16,128], index: 2, kind: input, shape index: {}]   ;;  %s4373_s3 = inlined_call_operand.vmem [shape: f32[8,16], index: 3, kind: input, shape index: {}]   ;;  %s4374_s4 = inlined_call_operand.hbm [shape: bf16[256,384], index: 4, kind: input, shape index: {}]   ;;  %s4375_s5 = inlined_call_operand.vmem [shape: bf16[128,128], index: 5, kind: input, shape index: {}]   ;;  %s4376_s6 = inlined_call_operand.hbm [shape: bf16[128,512], index: 6, kind: input, shape index: {}]   ;;  %s4377_s7 = inlined_call_operand.vmem [shape: f32[1,128], index: 7, kind: input, shape index: {}]   ;;  %s4378_s8 = inlined_call_operand.vmem [shape: f32[1,128], index: 8, kind: input, shape index: {}]   ;;  %s4379_s9 = inlined_call_operand.hbm [shape: bf16[128,640], index: 9, kind: input, shape index: {}]   ;;  %s4380_s10 = inlined_call_operand.vmem [shape: f32[1,384], index: 10, kind: input, shape index: {}]   ;;  %s4381_s11 = inlined_call_operand.vmem [shape: f32[1,384], index: 11, kind: input, shape index: {}]   ;;  %s4382_s12 = inlined_call_operand.hbm [shape: bf16[128,256], index: 12, kind: input, shape index: {}]   ;;  %s4383_s13 = inlined_call_operand.vmem [shape: f32[1,256], index: 13, kind: input, shape index: {}]   ;;  %s4384_s14 = inlined_call_operand.hbm [shape: f32[8,8,256], index: 14, kind: output, shape index: {0}]   ;;  %s4385_s15 = inlined_call_operand.hbm [shape: f32[8,128], index: 15, kind: output, shape index: {1}]   ;;  %s4386_s16 = inlined_call_operand.hbm [shape: f32[8,8,16], index: 16, kind: output, shape index: {2}]  }
   0x1   :  { %4404 = sst [smem:[#allocation27_spill]] %s4370_s0 }
   0x2   :  { %4405 = sst [smem:[#allocation28_spill]] %s4371_s1 }
   0x3   :  { %4406 = sst [smem:[#allocation29_spill]] %s4374_s4 }
   0x4   :  { %4407 = sst [smem:[#allocation30_spill]] %s4383_s13 }
   0x5   :  { %4408 = sst [smem:[#allocation31_spill]] %s4384_s14 }
   0x6   :  { %4409 = sst [smem:[#allocation32_spill]] %s4386_s16 }
   0x7   :  { %22 = vsyncpa [#allocation4], 0 }
   0x8   :  { %23 = vsyncpa [#allocation7], 0 }
   0x9   :  { %24 = vsyncpa [#allocation10], 0 }
   0xa   :  { %25 = vsyncpa [#allocation5], 0 }
   0xb   :  { %27 = vsyncpa [#allocation5 + $0x1], 0 }
   0xc   :  { %28 = vsyncpa [#allocation14], 0  ;;  %s3858_s21 = smov 0   ;;  %s3860_s22 = smov 0  }
   0xd   :  { %s3862_s23 = smov 0   ;;  %s3864_s24 = smov 0  }
   0xe LB: > { %4410 = sst [smem:[#allocation21_spill]] %s3746_s23  ;;  %s3877_s25 = sadd.s32 4294967295, %s3750_s24   ;;  %s3750_s24 = sphi %s3864_s24, %s4451_s24   ;;  %s3746_s23 = sphi %s3862_s23, %s4453_s23   ;;  %s3742_s22 = sphi %s3860_s22, %s4455_s22   ;;  %s3738_s21 = sphi %s3858_s21, %s4454_s21  }
   0xf   : > { %4411 = sst [smem:[#allocation22_spill]] %s3750_s24  ;;  %s4387_s26 = sadd.s32 4294967294, %s3750_s24  }
  0x10   : > { %s3881_s27 = sadd.s32 1, %s3750_s24   ;;  %s340_s28 = sadd.s32 1, %s3746_s23 }
  0x11   : > { %4412 = sst [smem:[#allocation23_spill]] %s3881_s27  ;;  %s337_s29 = ssub.s32 %s3750_s24, %s3881_s27 }
  0x12   : > { %p350_p0 = scmp.ne.s32.totalorder %s3746_s23, %s3742_s22  ;;  %p338_p1 = scmp.eq.s32.totalorder %s337_s29, 0 }
  0x13   : > { %p4394_p2 = scmp.eq.s32.totalorder %s3877_s25, 7  ;;  %p356_p3 = scmp.ne.s32.totalorder %s3742_s22, %s3738_s21 }
  0x14   : > { %p357_p4 = scmp.eq.s32.totalorder %s4387_s26, 7  ;;  %p2815_p7 = scmp.ge.s32.totalorder %s3750_s24, 1 }
  0x15   : > { %s3893_s30 = scalar_select %p338_p1, %s3746_s23, %s340_s28  }
  0x16   : > { %p3897_p5 = por %p4394_p2, %p350_p0  ;;  %p3901_p6 = por %p357_p4, %p356_p3 }
  0x17   : > { %4413 = sst [smem:[#allocation24_spill]] %s3893_s30  ;;  %p411_p8 = scmp.lt.s32.totalorder %s3750_s24, 9 }
  0x18   : > { %s4414_s0 = scalar_select %p3897_p5, 1, 0 }
  0x19   : > { %s4416_s17 = scalar_select %p3901_p6, 1, 0 }
  0x1a   : > { %4415 = sst [smem:[#allocation25_spill]] %s4414_s0  ;;  %p4395_p10 = scmp.eq.s32.totalorder %s3877_s25, 0 }
  0x1b   : > { %4417 = sst [smem:[#allocation26_spill]] %s4416_s17  ;;  %p3909_p11 = pnand %p2815_p7, %p411_p8 }
  0x1c   : > { %s3752_s19 = smov [#allocation6]   ;;  %s3753_s28 = smov [#allocation9]  }
  0x1d   : > { %s4418_s18 = scalar_select %p3909_p11, 1, 0 }
  0x1e   : > { %s442_s20 = sshll.u32 %s3752_s19, 4  ;;  %p3143_p12 = pneg %p3909_p11  ;;  %s443_s20 = int_to_ptr.vmem [resolvable:$true] %s442_s20 }
  0x1f   : > { %s477_s29 = sshll.u32 %s3753_s28, 4  ;;  %s4420_s4 = sld [smem:[#allocation29_spill]]  ;;  %s3921_s29 = int_to_ptr.vmem [resolvable:$true] %s477_s29 }
  0x20   : > { %p3917_p13 = pnand %p4395_p10, %p3143_p12 }
  0x22   : > { %p3931_p1 = pneg %p3917_p13 }
  0x25   : > { %s3478_s23 = scalar_lea.hbm %s4420_s4, 6144 }
  0x26   : > { %p3479_p0 = scmp.ne.s32.totalorder %s4420_s4, %s3478_s23  ;;  %p3485_p7 = scmp.lt.u32.totalorder %s3478_s23, %s4420_s4 }
  0x28   : > { %p3481_p3 = pnand %p3931_p1, %p3479_p0 }
  0x2a   : > { %p3482_p4 = pneg %p3481_p3 }
  0x2c   : > { %p3487_p8 = pnand %p3485_p7, %p3482_p4 }
  0x2e   : > { %3490 = shalt.err (!%p3487_p8)
}
  0x2f   : > { %s3491_s26 = scalar_lea.vmem %s443_s20, 6144  ;;  %p3499_p10 = scmp.lt.s32.totalorder %s443_s20, %s443_s20 }
  0x30   : > { %p3492_p12 = scmp.ne.s32.totalorder %s443_s20, %s3491_s26  ;;  %p3500_p6 = scmp.lt.s32.totalorder %s3491_s26, %s3491_s26 }
  0x32   : > { %p3494_p2 = pnand %p3492_p12, %p3931_p1  ;;  %p3501_p5 = por %p3500_p6, %p3499_p10 }
  0x34   : > { %p3495_p9 = pneg %p3494_p2 }
  0x36   : > { %p3502_p11 = pnand %p3501_p5, %p3495_p9 }
  0x38   : > { %3505 = shalt.err (!%p3502_p11)
}
  0x39   : > { %s3754_s27 = smov 192   ;;  %s3755_s30 = smov 12  }
  0x3a   : > { %3149 = dma.hbm_to_vmem [thread:$0]  (!%p3917_p13), %s4420_s4, 6144, %s443_s20, [#allocation7], %s3754_s27, %s3754_s27, %s3755_s30  }
  0x3b   : > { %s3506_s16 = scalar_lea.hbm %s4379_s9, 5120 }
  0x3c   : > { %p3507_p2 = scmp.ne.s32.totalorder %s4379_s9, %s3506_s16  ;;  %p3513_p9 = scmp.lt.u32.totalorder %s3506_s16, %s4379_s9 }
  0x3e   : > { %p3509_p5 = pnand %p3507_p2, %p3931_p1 }
  0x40   : > { %p3510_p6 = pneg %p3509_p5 }
  0x42   : > { %p3515_p10 = pnand %p3513_p9, %p3510_p6 }
  0x44   : > { %3518 = shalt.err (!%p3515_p10)
}
  0x45   : > { %s3519_s20 = scalar_lea.vmem %s3921_s29, 5120  ;;  %p3527_p4 = scmp.lt.s32.totalorder %s3921_s29, %s3921_s29 }
  0x46   : > { %p3520_p11 = scmp.ne.s32.totalorder %s3921_s29, %s3519_s20  ;;  %p3528_p7 = scmp.lt.s32.totalorder %s3519_s20, %s3519_s20 }
  0x48   : > { %p3522_p0 = pnand %p3520_p11, %p3931_p1  ;;  %p3529_p8 = por %p3528_p7, %p3527_p4 }
  0x4a   : > { %p3523_p3 = pneg %p3522_p0 }
  0x4c   : > { %p3530_p12 = pnand %p3529_p8, %p3523_p3 }
  0x4e   : > { %3533 = shalt.err (!%p3530_p12)
}
  0x4f   : > { %s3756_s14 = smov 320   ;;  %s3757_s13 = smov 20  }
  0x50   : > { %3155 = dma.hbm_to_vmem [thread:$0]  (!%p3917_p13), %s4379_s9, 5120, %s3921_s29, [#allocation10], %s3756_s14, %s3756_s14, %s3757_s13  }
  0x51   : > { %s3758_s27 = smov [#allocation3]   ;;  %s3534_s17 = scalar_lea.hbm %s4372_s2, 2048 }
  0x52   : > { %s426_s30 = sshll.u32 %s3758_s27, 4  ;;  %p3535_p2 = scmp.ne.s32.totalorder %s4372_s2, %s3534_s17  ;;  %s427_s30 = int_to_ptr.vmem [resolvable:$true] %s426_s30 }
  0x53   : > { %p3541_p9 = scmp.lt.u32.totalorder %s3534_s17, %s4372_s2 }
  0x54   : > { %p3537_p5 = pnand %p3535_p2, %p3931_p1 }
  0x56   : > { %p3538_p6 = pneg %p3537_p5 }
  0x58   : > { %p3543_p10 = pnand %p3541_p9, %p3538_p6 }
  0x5a   : > { %3546 = shalt.err (!%p3543_p10)
}
  0x5b   : > { %s3547_s29 = scalar_lea.vmem %s427_s30, 2048  ;;  %p3555_p4 = scmp.lt.s32.totalorder %s427_s30, %s427_s30 }
  0x5c   : > { %p3548_p11 = scmp.ne.s32.totalorder %s427_s30, %s3547_s29  ;;  %p3556_p7 = scmp.lt.s32.totalorder %s3547_s29, %s3547_s29 }
  0x5e   : > { %p3550_p0 = pnand %p3548_p11, %p3931_p1  ;;  %p3557_p8 = por %p3556_p7, %p3555_p4 }
  0x60   : > { %p3551_p3 = pneg %p3550_p0 }
  0x62   : > { %p3558_p12 = pnand %p3557_p8, %p3551_p3 }
  0x64   : > { %3561 = shalt.err (!%p3558_p12)
}
  0x65   : > { %s4402_s14 = smov 128   ;;  %s4403_s13 = smov 8  }
  0x66   : > { %3146 = dma.hbm_to_vmem [thread:$0]  (!%p3917_p13), %s4372_s2, 2048, %s427_s30, [#allocation4], %s4402_s14, %s4402_s14, %s4403_s13  }
  0x67   : > { %s3761_s0 = smov [#allocation8]   ;;  %s3562_s17 = scalar_lea.hbm %s4376_s6, 4096 }
  0x68   : > { %s458_s27 = sshll.u32 %s3761_s0, 4  ;;  %p3563_p2 = scmp.ne.s32.totalorder %s4376_s6, %s3562_s17  ;;  %s459_s27 = int_to_ptr.vmem [resolvable:$true] %s458_s27 }
  0x69   : > { %p3569_p9 = scmp.lt.u32.totalorder %s3562_s17, %s4376_s6 }
  0x6a   : > { %p3565_p5 = pnand %p3563_p2, %p3931_p1 }
  0x6c   : > { %p3566_p6 = pneg %p3565_p5 }
  0x6e   : > { %p3571_p10 = pnand %p3569_p9, %p3566_p6 }
  0x70   : > { %3574 = shalt.err (!%p3571_p10)
}
  0x71   : > { %s3575_s30 = scalar_lea.vmem %s459_s27, 4096  ;;  %p3583_p4 = scmp.lt.s32.totalorder %s459_s27, %s459_s27 }
  0x72   : > { %p3576_p11 = scmp.ne.s32.totalorder %s459_s27, %s3575_s30  ;;  %p3584_p7 = scmp.lt.s32.totalorder %s3575_s30, %s3575_s30 }
  0x74   : > { %p3578_p0 = pnand %p3576_p11, %p3931_p1  ;;  %p3585_p8 = por %p3584_p7, %p3583_p4 }
  0x76   : > { %p3579_p3 = pneg %p3578_p0 }
  0x78   : > { %p3586_p12 = pnand %p3585_p8, %p3579_p3 }
  0x7a   : > { %3589 = shalt.err (!%p3586_p12)
}
  0x7b   : > { %s3762_s4 = smov 256   ;;  %s3763_s16 = smov 16  }
  0x7c   : > { %3152 = dma.hbm_to_vmem [thread:$0]  (!%p3917_p13), %s4376_s6, 4096, %s459_s27, [#allocation7], %s3762_s4, %s3762_s4, %s3763_s16  }
  0x7d   : > { %s3764_s23 = smov [#allocation11]   ;;  %s3590_s20 = scalar_lea.hbm %s4382_s12, 2048 }
  0x7e   : > { %s496_s17 = sshll.u32 %s3764_s23, 4  ;;  %p3591_p2 = scmp.ne.s32.totalorder %s4382_s12, %s3590_s20  ;;  %s497_s17 = int_to_ptr.vmem [resolvable:$true] %s496_s17 }
  0x7f   : > { %p3597_p9 = scmp.lt.u32.totalorder %s3590_s20, %s4382_s12 }
  0x80   : > { %p3593_p5 = pnand %p3591_p2, %p3931_p1 }
  0x82   : > { %p3594_p6 = pneg %p3593_p5 }
  0x84   : > { %p3599_p10 = pnand %p3597_p9, %p3594_p6 }
  0x86   : > { %3602 = shalt.err (!%p3599_p10)
}
  0x87   : > { %s3603_s27 = scalar_lea.vmem %s497_s17, 2048  ;;  %p3611_p4 = scmp.lt.s32.totalorder %s497_s17, %s497_s17 }
  0x88   : > { %p3604_p11 = scmp.ne.s32.totalorder %s497_s17, %s3603_s27  ;;  %p3612_p7 = scmp.lt.s32.totalorder %s3603_s27, %s3603_s27 }
  0x8a   : > { %p3606_p0 = pnand %p3604_p11, %p3931_p1  ;;  %p3613_p8 = por %p3612_p7, %p3611_p4 }
  0x8c   : > { %p3607_p3 = pneg %p3606_p0 }
  0x8e   : > { %p3614_p12 = pnand %p3613_p8, %p3607_p3 }
  0x90   : > { %3617 = shalt.err (!%p3614_p12)
}
  0x91   : > { %s4422_s4 = smov 8   ;;  %s4423_s16 = smov 128  }
  0x92   : > { %3158 = dma.hbm_to_vmem [thread:$0]  (!%p3917_p13), %s4382_s12, 2048, %s497_s17, [#allocation10], %s4423_s16, %s4423_s16, %s4422_s4  }
  0x93   : > { %p4424_p2 = scmp.ne.s32.totalorder %s4418_s18, 0 }
  0x94   : > { %p4425_p1 = scmp.eq.s32.totalorder (!%p4424_p2), %s3877_s25, 0 }
  0x95   : > { %522 = sbr.rel (%p4424_p2) target bundleno = 1946 (0x79a), region = 76 }
  0x9c   : > { %3717 = dma.done.wait (%p4425_p1), [#allocation4], 2048   ;;  %p4426_p5 = pmov %p4425_p1 }
  0x9d   : > { %p4427_p6 = pmov %p4425_p1 }
  0x9e   : > { %3719 = vsyncadd (%p4426_p5), [#allocation4], 4294965248 }
  0x9f   : > { %3721 = dma.done.wait (%p4427_p6), [#allocation7], 10240   ;;  %p4428_p9 = pmov %p4425_p1 }
  0xa0   : > { %p4429_p10 = pmov %p4425_p1 }
  0xa1   : > { %3723 = vsyncadd (%p4428_p9), [#allocation7], 4294957056 }
  0xa2   : > { %3725 = dma.done.wait (%p4429_p10), [#allocation10], 7168   ;;  %p4430_p13 = pmov %p4425_p1 }
  0xa3   : > { %s580_s18 = sand.u32 1, %s3742_s22   ;;  %p592_p11 = scmp.lt.s32.totalorder %s3877_s25, 7 }
  0xa4   : > { %3727 = vsyncadd (%p4430_p13), [#allocation10], 4294960128  ;;  %s2828_s21 = sshll.u32 %s580_s18, 4  ;;  %s4046_s19 = sshll.u32 %s580_s18, 3 }
  0xa5   : > { %s593_s0 = scalar_select %p592_p11, %s3877_s25, 7 }
  0xa6   : > { %s4431_s28 = sld [smem:[#allocation27_spill]]  ;;  %s4054_s20 = scalar_lea.vmem [#allocation12], %s2828_s21 }
  0xa7   : > { %s2830_s24 = sshll.u32 %s593_s0, 3  ;;  %s591_s29 = scalar_lea.vmem [#allocation15], %s4046_s19 }
  0xa8   : > { %p4432_p0 = scmp.ne.s32.totalorder %s3877_s25, 0 }
  0xa9   : > { %s4433_s1 = sld [smem:[#allocation28_spill]] (!%p4432_p0)  ;;  %v3230_v1 = vld [vmem:[%s4375_s5] sm:$0xff] (!%p4432_p0)   ;;  %v3231_v2 = vld [vmem:[%s4375_s5 + $0x8] sm:$0xff] (!%p4432_p0)   ;;  %v3232_v3 = vld [vmem:[%s4375_s5 + $0x10] sm:$0xff] (!%p4432_p0)  }
  0xaa   : > { %600 = sbr.rel (%p4432_p0) target bundleno = 426 (0x1aa), region = 100  ;;  %3047 = vmatprep.subr.bf16.mxu0 (!%p4432_p0), %v3230_v1  ;;  %3099 = vmatprep.subr.bf16.mxu1 (!%p4432_p0), %v3230_v1  ;;  %v603_v4 = vld [vmem:[#allocation3] sm:$0xff] (!%p4432_p0)  ;;  %v604_v5 = vld [vmem:[#allocation3 + $0x8] sm:$0xff] (!%p4432_p0)  ;;  %v3233_v6 = vld [vmem:[%s4375_s5 + $0x18] sm:$0xff] (!%p4432_p0)  }
  0xab   : > { %3048 = vmatpush3.bf16.msra.mxu0 (!%p4432_p0), %v3230_v1  ;;  %3107 = vmatpush3.bf16.msra.mxu1 (!%p4432_p0), %v3230_v1  ;;  %v619_v7 = vpack.c.bf16 (!%p4432_p0), %v604_v5, %v603_v4  ;;  %v611_v8 = vld [vmem:[#allocation3 + $0x40] sm:$0xff] (!%p4432_p0)  ;;  %v612_v9 = vld [vmem:[#allocation3 + $0x48] sm:$0xff] (!%p4432_p0)  ;;  %v3236_v13 = vld [vmem:[%s4375_s5 + $0x30] sm:$0xff] (!%p4432_p0)  }
  0xac   : > { %s4052_s26 = scalar_lea.vmem %s4431_s28, %s2830_s24  ;;  %3049 = vmatprep.subr.bf16.mxu0 (!%p4432_p0), %v3231_v2  ;;  %3100 = vmatprep.subr.bf16.mxu1 (!%p4432_p0), %v3231_v2  ;;  %v623_v10 = vpack.c.bf16 (!%p4432_p0), %v612_v9, %v611_v8  ;;  %v3234_v11 = vld [vmem:[%s4375_s5 + $0x20] sm:$0xff] (!%p4432_p0)   ;;  %v3235_v12 = vld [vmem:[%s4375_s5 + $0x28] sm:$0xff] (!%p4432_p0)   ;;  %v3237_v14 = vld [vmem:[%s4375_s5 + $0x38] sm:$0xff] (!%p4432_p0)  }
  0xad   : > { %3063 = vmatprep.mubr.bf16.mxu0 (!%p4432_p0), %v619_v7  ;;  %v605_v15 = vld [vmem:[#allocation3 + $0x10] sm:$0xff] (!%p4432_p0)  ;;  %v606_v16 = vld [vmem:[#allocation3 + $0x18] sm:$0xff] (!%p4432_p0)  ;;  %v607_v19 = vld [vmem:[#allocation3 + $0x20] sm:$0xff] (!%p4432_p0) }
  0xae   : > { %3071 = vmatprep.mubr.bf16.mxu1 (!%p4432_p0), %v623_v10  ;;  %v613_v17 = vld [vmem:[#allocation3 + $0x50] sm:$0xff] (!%p4432_p0)  ;;  %v614_v18 = vld [vmem:[#allocation3 + $0x58] sm:$0xff] (!%p4432_p0)  ;;  %v608_v20 = vld [vmem:[#allocation3 + $0x28] sm:$0xff] (!%p4432_p0)  ;;  %v620_v23 = vpack.c.bf16 (!%p4432_p0), %v606_v16, %v605_v15 }
  0xaf   : > { %v601_v0 = vld [vmem:[%s4433_s1] sm:$0xff] (!%p4432_p0)  ;;  %3050 = vmatpush3.bf16.msra.mxu0 (!%p4432_p0), %v3231_v2  ;;  %3108 = vmatpush3.bf16.msra.mxu1 (!%p4432_p0), %v3231_v2  ;;  %v616_v22 = vld [vmem:[#allocation3 + $0x68] sm:$0xff] (!%p4432_p0)  ;;  %v624_v24 = vpack.c.bf16 (!%p4432_p0), %v614_v18, %v613_v17  ;;  %v621_v25 = vpack.c.bf16 (!%p4432_p0), %v608_v20, %v607_v19  ;;  %v609_v27 = vld [vmem:[#allocation3 + $0x30] sm:$0xff] (!%p4432_p0) }
  0xb0   : > { %602 = vst [vmem:[#allocation13] sm:$0xff] (!%p4432_p0), %v601_v0  ;;  %3051 = vmatprep.subr.bf16.mxu0 (!%p4432_p0), %v3232_v3  ;;  %3101 = vmatprep.subr.bf16.mxu1 (!%p4432_p0), %v3232_v3  ;;  %v615_v21 = vld [vmem:[#allocation3 + $0x60] sm:$0xff] (!%p4432_p0)  ;;  %v610_v28 = vld [vmem:[#allocation3 + $0x38] sm:$0xff] (!%p4432_p0)  ;;  %v617_v29 = vld [vmem:[#allocation3 + $0x70] sm:$0xff] (!%p4432_p0) }
  0xb1   : > { %v625_v26 = vpack.c.bf16 %v616_v22, %v615_v21  ;;  %v618_v30 = vld [vmem:[#allocation3 + $0x78] sm:$0xff]  ;;  %v622_v31 = vpack.c.bf16 %v610_v28, %v609_v27 }
  0xb2   : > { %v626_v32 = vpack.c.bf16 %v618_v30, %v617_v29 }
  0xb3   : > { %3052 = vmatpush3.bf16.msra.mxu0 %v3232_v3  ;;  %3109 = vmatpush3.bf16.msra.mxu1 %v3232_v3 }
  0xb4   : > { %3053 = vmatprep.subr.bf16.mxu0 %v3233_v6  ;;  %3102 = vmatprep.subr.bf16.mxu1 %v3233_v6 }
  0xb7   : > { %3054 = vmatpush3.bf16.msra.mxu0 %v3233_v6  ;;  %3110 = vmatpush3.bf16.msra.mxu1 %v3233_v6 }
  0xb8   : > { %3055 = vmatprep.subr.bf16.mxu0 %v3234_v11  ;;  %3103 = vmatprep.subr.bf16.mxu1 %v3234_v11 }
  0xbb   : > { %3056 = vmatpush3.bf16.msra.mxu0 %v3234_v11  ;;  %3111 = vmatpush3.bf16.msra.mxu1 %v3234_v11 }
  0xbc   : > { %3057 = vmatprep.subr.bf16.mxu0 %v3235_v12  ;;  %3104 = vmatprep.subr.bf16.mxu1 %v3235_v12 }
  0xbf   : > { %3058 = vmatpush3.bf16.msra.mxu0 %v3235_v12  ;;  %3112 = vmatpush3.bf16.msra.mxu1 %v3235_v12 }
  0xc0   : > { %3059 = vmatprep.subr.bf16.mxu0 %v3236_v13  ;;  %3105 = vmatprep.subr.bf16.mxu1 %v3236_v13 }
  0xc3   : > { %3060 = vmatpush3.bf16.msra.mxu0 %v3236_v13  ;;  %3113 = vmatpush3.bf16.msra.mxu1 %v3236_v13 }
  0xc4   : > { %3061 = vmatprep.subr.bf16.mxu0 %v3237_v14  ;;  %3106 = vmatprep.subr.bf16.mxu1 %v3237_v14 }
  0xc7   : > { %3062 = vmatpush3.bf16.msra.mxu0 %v3237_v14  ;;  %3114 = vmatpush3.bf16.msra.mxu1 %v3237_v14 }
  0xca   : > { %3064 = vmatmul.mubr.bf16.vlgmr.msra.gmra.mrb[0].mxu0 %v620_v23  ;;  %3072 = vmatmul.mubr.bf16.vlgmr.msra.gmra.mrb[0].mxu1 %v624_v24 }
  0xcb   : > { %3067 = vmatprep.mubr.bf16.mxu0 %v621_v25  ;;  %3075 = vmatprep.mubr.bf16.mxu1 %v625_v26 }
  0xd2   : > { %3068 = vmatmul.mubr.bf16.gmra.mrb[4].mxu0 %v622_v31  ;;  %3076 = vmatmul.mubr.bf16.gmra.mrb[4].mxu1 %v626_v32 }
 0x19d   : > { %v3065_v33 = vpop.f32.mrb[0].mxu0  ;;  %v3073_v34 = vpop.f32.mrb[0].mxu1 }
 0x19e   : > { %790 = vst [vmem:[#allocation2 + $0x10] sm:$0xff] %v3065_v33  ;;  %798 = vst [vmem:[#allocation2 + $0x50] sm:$0xff] %v3073_v34  ;;  %v725_v35 = vpop.f32.mrb[1].mxu0  ;;  %v757_v36 = vpop.f32.mrb[1].mxu1 }
 0x19f   : > { %788 = vst [vmem:[#allocation2] sm:$0xff] %v725_v35  ;;  %796 = vst [vmem:[#allocation2 + $0x40] sm:$0xff] %v757_v36  ;;  %v3066_v37 = vpop.f32.mrb[2].mxu0  ;;  %v3074_v38 = vpop.f32.mrb[2].mxu1 }
 0x1a0   : > { %791 = vst [vmem:[#allocation2 + $0x18] sm:$0xff] %v3066_v37  ;;  %799 = vst [vmem:[#allocation2 + $0x58] sm:$0xff] %v3074_v38  ;;  %v728_v39 = vpop.f32.mrb[3].mxu0  ;;  %v760_v40 = vpop.f32.mrb[3].mxu1 }
 0x1a1   : > { %789 = vst [vmem:[#allocation2 + $0x8] sm:$0xff] %v728_v39  ;;  %797 = vst [vmem:[#allocation2 + $0x48] sm:$0xff] %v760_v40 }
 0x1a5   : > { %v3069_v41 = vpop.f32.mrb[4].mxu0  ;;  %v3077_v42 = vpop.f32.mrb[4].mxu1 }
 0x1a6   : > { %794 = vst [vmem:[#allocation2 + $0x30] sm:$0xff] %v3069_v41  ;;  %802 = vst [vmem:[#allocation2 + $0x70] sm:$0xff] %v3077_v42  ;;  %v741_v43 = vpop.f32.mrb[5].mxu0  ;;  %v773_v44 = vpop.f32.mrb[5].mxu1 }
 0x1a7   : > { %792 = vst [vmem:[#allocation2 + $0x20] sm:$0xff] %v741_v43  ;;  %800 = vst [vmem:[#allocation2 + $0x60] sm:$0xff] %v773_v44  ;;  %v3070_v45 = vpop.f32.mrb[6].mxu0  ;;  %v3078_v46 = vpop.f32.mrb[6].mxu1 }
 0x1a8   : > { %795 = vst [vmem:[#allocation2 + $0x38] sm:$0xff] %v3070_v45  ;;  %803 = vst [vmem:[#allocation2 + $0x78] sm:$0xff] %v3078_v46  ;;  %v744_v47 = vpop.f32.mrb[7].mxu0  ;;  %v776_v48 = vpop.f32.mrb[7].mxu1 }
 0x1a9   : > { %793 = vst [vmem:[#allocation2 + $0x28] sm:$0xff] %v744_v47  ;;  %801 = vst [vmem:[#allocation2 + $0x68] sm:$0xff] %v776_v48 }
 0x1aa PF: > { %v3239_v49 = vld [vmem:[#allocation8 + $0x4] ss:$16 sps:$4 sm:$0xff]   ;;  %v3241_v50 = vld [vmem:[#allocation8] ss:$16 sps:$4 sm:$0xff]   ;;  %v3765_v51 = vmov 0   ;;  %v822_v6 = vlaneseq  ;;  %v1204_v25 = vld [vmem:[#allocation2 + $0x8] sm:$0xff] }
 0x1ab   : > { %1125 = vmatprep.mubr.bf16.mxu0 %v3765_v51  ;;  %3238 = vset.pattern.permute.xlu0 %v3765_v51  ;;  %v3242_v52 = vld [vmem:[#allocation8 + $0x24] ss:$16 sps:$4 sm:$0xff]   ;;  %v3244_v53 = vld [vmem:[#allocation8 + $0x20] ss:$16 sps:$4 sm:$0xff]   ;;  %v3766_v4 = vmov 1966171168  }
 0x1ac   : > { %1093 = vmatprep.subr.bf16.mxu0 %v3239_v49  ;;  %1166 = vmatprep.mubr.bf16.mxu1 %v3765_v51  ;;  %v3245_v54 = vld [vmem:[#allocation8 + $0x44] ss:$16 sps:$4 sm:$0xff]   ;;  %v3247_v55 = vld [vmem:[#allocation8 + $0x40] ss:$16 sps:$4 sm:$0xff]   ;;  %v1222_v5 = vunpack.c.l.s4 %v3766_v4  ;;  %v4094_v8 = vshrl.u32 %v822_v6, 7  ;;  %v1206_v35 = vld [vmem:[#allocation2 + $0x18] sm:$0xff] }
 0x1ad   : > { %1094 = vmatpush1.bf16.msra.mxu0 %v3241_v50  ;;  %v3248_v56 = vld [vmem:[#allocation8 + $0x64] ss:$16 sps:$4 sm:$0xff]   ;;  %v3250_v57 = vld [vmem:[#allocation8 + $0x60] ss:$16 sps:$4 sm:$0xff]   ;;  %v1212_v50 = vld [vmem:[#allocation2 + $0x48] sm:$0xff]  ;;  %vm1423_vm0 = vcmask 130112  }
 0x1ae   : > { %1095 = vmatprep.subr.bf16.mxu0 %v3242_v52  ;;  %v3251_v58 = vld [vmem:[#allocation8 + $0x84] ss:$16 sps:$4 sm:$0xff]   ;;  %v3253_v59 = vld [vmem:[#allocation8 + $0x80] ss:$16 sps:$4 sm:$0xff]   ;;  %v1223_v7 = vunpack.c.0.s8 %v1222_v5  ;;  %v4103_v19 = vsub.s32 0, %v4094_v8  ;;  %v1214_v5 = vld [vmem:[#allocation2 + $0x58] sm:$0xff] }
 0x1af   : > { %v3254_v60 = vld [vmem:[#allocation8 + $0xa4] ss:$16 sps:$4 sm:$0xff]   ;;  %v3256_v61 = vld [vmem:[#allocation8 + $0xa0] ss:$16 sps:$4 sm:$0xff]   ;;  %vm1488_vm1 = vcmask 1041409   ;;  %vm1490_vm2 = vcmask 1042434  }
 0x1b0   : > { %v3257_v62 = vld [vmem:[#allocation8 + $0xc4] ss:$16 sps:$4 sm:$0xff]   ;;  %v3259_v63 = vld [vmem:[#allocation8 + $0xc0] ss:$16 sps:$4 sm:$0xff]   ;;  %v1226_v10 = vsub.s32 %v1223_v7, %v4094_v8  ;;  %v1208_v42 = vld [vmem:[#allocation2 + $0x28] sm:$0xff]  ;;  %vm1492_vm3 = vcmask 1043459  }
 0x1b1   : > { %1096 = vmatpush1.bf16.msra.mxu0 %v3244_v53  ;;  %v3260_v0 = vld [vmem:[#allocation8 + $0xe4] ss:$16 sps:$4 sm:$0xff]   ;;  %v3262_v1 = vld [vmem:[#allocation8 + $0xe0] ss:$16 sps:$4 sm:$0xff]   ;;  %vm1494_vm4 = vcmask 1044484   ;;  %vm1496_vm5 = vcmask 1045509  }
 0x1b2   : > { %1097 = vmatprep.subr.bf16.mxu0 %v3245_v54  ;;  %v804_v2 = vld [vmem:[#allocation13] sm:$0xff]  ;;  %v1205_v33 = vld [vmem:[#allocation2 + $0x10] sm:$0xff]  ;;  %vm1498_vm6 = vcmask 1046534   ;;  %vm1500_vm7 = vcmask 1047559   ;;  %vm1504_vm9 = vcmask 130048   ;;  %vm3768_vm12 = vmmov 0  }
 0x1b3   : > { %v4089_v3 = vpack.c.bf16 %v804_v2, %v804_v2  ;;  %v2874_v9 = vld [vmem:[%s4377_s7] ss:$0 sm:$0xff]  ;;  %v1209_v46 = vld [vmem:[#allocation2 + $0x30] sm:$0xff]  ;;  %s3770_s27 = smov [#allocation13]   ;;  %p4436_p4 = scmp.eq.s32.totalorder %s3877_s25, 7 }
 0x1b4   : > { %v1203_v21 = vld [vmem:[#allocation2] sm:$0xff]  ;;  %s2652_s4 = sshll.u32 %s3770_s27, 4  ;;  %s2653_s4 = int_to_ptr.vmem [resolvable:$true] %s2652_s4 }
 0x1b5   : > { %1098 = vmatpush1.bf16.msra.mxu0 %v3247_v55  ;;  %v1207_v31 = vld [vmem:[#allocation2 + $0x20] sm:$0xff]  ;;  %v1213_v55 = vld [vmem:[#allocation2 + $0x50] sm:$0xff]  ;;  %s3618_s16 = scalar_lea.vmem %s2653_s4, 128  ;;  %p3625_p12 = scmp.lt.s32.totalorder %s2653_s4, %s2653_s4 }
 0x1b6   : > { %1099 = vmatprep.subr.bf16.mxu0 %v3248_v56  ;;  %v1211_v39 = vld [vmem:[#allocation2 + $0x40] sm:$0xff]  ;;  %p3619_p3 = scmp.ne.s32.totalorder %s2653_s4, %s3618_s16  ;;  %p3626_p2 = scmp.lt.s32.totalorder %s3618_s16, %s3618_s16 }
 0x1b7   : > { %v4113_v47 = vld [vmem:[%s4378_s8] ss:$0 sm:$0xff] }
 0x1b8   : > { %p3620_p7 = pnand %p3619_p3, %p4436_p4  ;;  %p3627_p1 = por %p3626_p2, %p3625_p12 }
 0x1b9   : > { %1100 = vmatpush1.bf16.msra.mxu0 %v3250_v57 }
 0x1ba   : > { %1101 = vmatprep.subr.bf16.mxu0 %v3251_v58  ;;  %p3621_p8 = pneg %p3620_p7 }
 0x1bc   : > { %p3628_p5 = pnand %p3627_p1, %p3621_p8 }
 0x1bd   : > { %1102 = vmatpush1.bf16.msra.mxu0 %v3253_v59  ;;  %v1210_v59 = vld [vmem:[#allocation2 + $0x38] sm:$0xff] }
 0x1be   : > { %1103 = vmatprep.subr.bf16.mxu0 %v3254_v60 }
 0x1c1   : > { %1104 = vmatpush1.bf16.msra.mxu0 %v3256_v61 }
 0x1c2   : > { %1105 = vmatprep.subr.bf16.mxu0 %v3257_v62 }
 0x1c5   : > { %1106 = vmatpush1.bf16.msra.mxu0 %v3259_v63  ;;  %v1215_v63 = vld [vmem:[#allocation2 + $0x60] sm:$0xff] }
 0x1c6   : > { %1107 = vmatprep.subr.bf16.mxu0 %v3260_v0 }
 0x1c9   : > { %1108 = vmatpush1.bf16.msra.mxu0 %v3262_v1 }
 0x1cc   : > { %1126 = vmatmul.mubr.bf16.vlgmr.msra.gmra.mrb[0].mxu0 %v4089_v3 }
 0x1cd   : > { %1998 = vmatprep.mubr.bf16.mxu0 %v3765_v51 }
 0x29f   : > { %v1127_v11 = vpop.f32.mrb[0].mxu0 }
 0x2a0   : > { %v1182_v12 = vadd.f32 %v2874_v9, %v1127_v11  ;;  %v4100_v13 = vpop.f32.mrb[1].mxu0 }
 0x2a1   : > { %v1131_v14 = vpop.f32.mrb[2].mxu0 }
 0x2a2   : > { %v1227_v15 = vrot.slane %v1182_v12, %v1226_v10  ;;  %v1132_v16 = vpop.f32.mrb[3].mxu0  ;;  %v1220_v17 = vcombine.high %v1182_v12, %v1182_v12  ;;  %v1217_v14 = vld [vmem:[#allocation2 + $0x70] sm:$0xff] }
 0x2a4   : > { %v1243_v18 = vrot.slane %v1227_v15, %v1226_v10  ;;  %v1235_v20 = vcombine.high %v1227_v15, %v1227_v15  ;;  %v1234_v23 = vrot.slane %v1220_v17, %v1226_v10  ;;  %v1216_v17 = vld [vmem:[#allocation2 + $0x68] sm:$0xff] }
 0x2a6   : > { %v1272_v22 = vrot.slane %v1243_v18, %v4103_v19  ;;  %v1265_v24 = vcombine.high %v1243_v18, %v1243_v18  ;;  %v1257_v26 = vrot.slane %v1235_v20, %v1226_v10  ;;  %v1250_v28 = vrot.slane %v1234_v23, %v1226_v10 }
 0x2a7   : > { %v1236_v34 = vcombine.high %v1234_v23, %v1234_v23 }
 0x2a8   : > { %v1309_v27 = vadd.f32 %v1272_v22, %v1203_v21  ;;  %v1280_v29 = vrot.slane %v1265_v24, %v4103_v19  ;;  %v1310_v30 = vadd.f32 %v1272_v22, %v1204_v25  ;;  %v1276_v32 = vrot.slane %v1257_v26, %v4103_v19 }
 0x2a9   : > { %v1267_v36 = vcombine.high %v1257_v26, %v1257_v26  ;;  %v1288_v37 = vrot.slane %v1250_v28, %v4103_v19  ;;  %v1264_v43 = vrot.slane %v1236_v34, %v1226_v10  ;;  %v1266_v52 = vcombine.high %v1250_v28, %v1250_v28  ;;  %v1218_v26 = vld [vmem:[#allocation2 + $0x78] sm:$0xff] }
 0x2aa   : > { %3431 = vtanh.f32 %v1309_v27  ;;  %v1313_v38 = vadd.f32 %v1280_v29, %v1207_v31  ;;  %v1311_v40 = vadd.f32 %v1276_v32, %v1205_v33  ;;  %v1312_v41 = vadd.f32 %v1276_v32, %v1206_v35 }
 0x2ab   : > { %3433 = vtanh.f32 %v1310_v30  ;;  %v1284_v44 = vrot.slane %v1267_v36, %v4103_v19  ;;  %v1317_v45 = vadd.f32 %v1288_v37, %v1211_v39  ;;  %v1314_v48 = vadd.f32 %v1280_v29, %v1208_v42 }
 0x2ac   : > { %3435 = vtanh.f32 %v1313_v38  ;;  %v1292_v53 = vrot.slane %v1264_v43, %v4103_v19  ;;  %v1318_v58 = vadd.f32 %v1288_v37, %v1212_v50  ;;  %v1268_v60 = vcombine.high %v1264_v43, %v1264_v43 }
 0x2ad   : > { %3437 = vtanh.f32 %v1311_v40  ;;  %v1315_v54 = vadd.f32 %v1284_v44, %v1209_v46  ;;  %v1296_v61 = vrot.slane %v1266_v52, %v4103_v19  ;;  %v1316_v4 = vadd.f32 %v1284_v44, %v1210_v59 }
 0x2ae   : > { %3439 = vtanh.f32 %v1312_v41  ;;  %v1319_v62 = vadd.f32 %v1292_v53, %v1213_v55  ;;  %v1300_v7 = vrot.slane %v1268_v60, %v4103_v19  ;;  %v1320_v16 = vadd.f32 %v1292_v53, %v1214_v5 }
 0x2af   : > { %3441 = vtanh.f32 %v1317_v45  ;;  %v1321_v9 = vadd.f32 %v1296_v61, %v1215_v63  ;;  %v1322_v24 = vadd.f32 %v1296_v61, %v1216_v17 }
 0x2b0   : > { %3443 = vtanh.f32 %v1314_v48  ;;  %v1323_v20 = vadd.f32 %v1300_v7, %v1217_v14  ;;  %v1324_v30 = vadd.f32 %v1300_v7, %v1218_v26 }
 0x2b1   : > { %3445 = vtanh.f32 %v1315_v54  ;;  %v4135_v54 = vand.u32 127, %v822_v6 }
 0x2b2   : > { %3447 = vtanh.f32 %v1318_v58 }
 0x2b3   : > { %3449 = vtanh.f32 %v1319_v62 }
 0x2b4   : > { %v3432_v49 = vpop.eup %3431  ;;  %3451 = vtanh.f32 %v1316_v4 }
 0x2b5   : > { %v1348_v56 = vmul.f32 %v3432_v49, %v4113_v47  ;;  %v3434_v57 = vpop.eup %3433  ;;  %3453 = vtanh.f32 %v1321_v9 }
 0x2b6   : > { %v1349_v0 = vmul.f32 %v3434_v57, %v4113_v47  ;;  %v3436_v1 = vpop.eup %3435  ;;  %3455 = vtanh.f32 %v1320_v16 }
 0x2b7   : > { %1364 = vadd.xlane.f32.xlu0 %v1348_v56  ;;  %v3438_v2 = vpop.eup %3437  ;;  %v1352_v12 = vmul.f32 %v3436_v1, %v4113_v47  ;;  %3457 = vtanh.f32 %v1323_v20  ;;  %v1418_v56 = vadd.s32 4294967288, %v4135_v54 }
 0x2b8   : > { %v1350_v10 = vmul.f32 %v3438_v2, %v4113_v47  ;;  %v3440_v11 = vpop.eup %3439  ;;  %3459 = vtanh.f32 %v1322_v24 }
 0x2b9   : > { %v3442_v15 = vpop.eup %3441  ;;  %v1351_v18 = vmul.f32 %v3440_v11, %v4113_v47  ;;  %3461 = vtanh.f32 %v1324_v30  ;;  %v1421_v59 = vsub.s32 %v1418_v56, %v4094_v8  ;;  %v3274_v56 = vld [vmem:[#allocation8 + $0x68] ss:$16 sps:$4 sm:$0xff]  }
 0x2ba   : > { %1368 = vadd.xlane.f32.xlu1 %v1350_v10  ;;  %v3444_v21 = vpop.eup %3443  ;;  %v1356_v22 = vmul.f32 %v3442_v15, %v4113_v47 }
 0x2bb   : > { %1366 = vadd.xlane.f32.xlu0 %v1349_v0  ;;  %v3446_v23 = vpop.eup %3445  ;;  %v1353_v25 = vmul.f32 %v3444_v21, %v4113_v47 }
 0x2bc   : > { %v3448_v27 = vpop.eup %3447  ;;  %v1354_v28 = vmul.f32 %v3446_v23, %v4113_v47 }
 0x2bd   : > { %v3450_v29 = vpop.eup %3449  ;;  %v1357_v31 = vmul.f32 %v3448_v27, %v4113_v47  ;;  %v1396_v27 = vld [vmem:[%s4373_s3] sm:$0xff] }
 0x2be   : > { %1370 = vadd.xlane.f32.xlu1 %v1351_v18  ;;  %v3452_v32 = vpop.eup %3451  ;;  %v1358_v33 = vmul.f32 %v3450_v29, %v4113_v47  ;;  %vm1397_vm8 = vcmp.ne.f32.partialorder %v1396_v27, 0.0  ;;  %v3301_v27 = vld [vmem:[#allocation9 + $0x54] ss:$20 sps:$4 sm:$0xff]  }
 0x2bf   : > { %1372 = vadd.xlane.f32.xlu0 %v1352_v12  ;;  %v3454_v34 = vpop.eup %3453  ;;  %v1355_v35 = vmul.f32 %v3452_v32, %v4113_v47 }
 0x2c0   : > { %v3456_v36 = vpop.eup %3455  ;;  %v1360_v37 = vmul.f32 %v3454_v34, %v4113_v47 }
 0x2c1   : > { %v3458_v38 = vpop.eup %3457  ;;  %v1359_v39 = vmul.f32 %v3456_v36, %v4113_v47 }
 0x2c2   : > { %1374 = vadd.xlane.f32.xlu1 %v1353_v25  ;;  %v3460_v40 = vpop.eup %3459  ;;  %v1362_v41 = vmul.f32 %v3458_v38, %v4113_v47 }
 0x2c3   : > { %1380 = vadd.xlane.f32.xlu0 %v1356_v22  ;;  %v1361_v42 = vmul.f32 %v3460_v40, %v4113_v47  ;;  %v3462_v43 = vpop.eup %3461 }
 0x2c4   : > { %v1363_v44 = vmul.f32 %v3462_v43, %v4113_v47  ;;  %v1416_v47 = vsub.s32 %v4135_v54, %v4094_v8 }
 0x2c6   : > { %1382 = vadd.xlane.f32.xlu1 %v1357_v31 }
 0x2c7   : > { %1376 = vadd.xlane.f32.xlu0 %v1354_v28 }
 0x2ca   : > { %1378 = vadd.xlane.f32.xlu1 %v1355_v35 }
 0x2cb   : > { %1384 = vadd.xlane.f32.xlu0 %v1358_v33 }
 0x2ce   : > { %1386 = vadd.xlane.f32.xlu1 %v1359_v39 }
 0x2cf   : > { %1388 = vadd.xlane.f32.xlu0 %v1360_v37 }
 0x2d2   : > { %1390 = vadd.xlane.f32.xlu1 %v1361_v42 }
 0x2d3   : > { %1392 = vadd.xlane.f32.xlu0 %v1362_v41 }
 0x2d6   : > { %1394 = vadd.xlane.f32.xlu1 %v1363_v44 }
 0x344   : > { %v1365_v45 = vpop.xlane.xlu0 %1364 }
 0x345   : > { %v1417_v5 = vrot.slane %v1365_v45, %v1416_v47  ;;  %v3263_v45 = vld [vmem:[#allocation8 + $0xc] ss:$16 sps:$4 sm:$0xff]  }
 0x346   : > { %1134 = vmatprep.subr.bf16.mxu1 %v3263_v45  ;;  %v3328_v45 = vld [vmem:[#allocation9 + $0xfc] ss:$20 sps:$4 sm:$0xff]  }
 0x347   : > { %v1369_v48 = vpop.xlane.xlu1 %1368 }
 0x348   : > { %v1367_v46 = vpop.xlane.xlu0 %1366  ;;  %v1428_v63 = vrot.slane %v1369_v48, %v1416_v47  ;;  %v3266_v48 = vld [vmem:[#allocation8 + $0x2c] ss:$16 sps:$4 sm:$0xff]  }
 0x349   : > { %v1422_v0 = vrot.slane %v1367_v46, %v1421_v59  ;;  %v3265_v46 = vld [vmem:[#allocation8 + $0x8] ss:$16 sps:$4 sm:$0xff]  }
 0x34a   : > { %1135 = vmatpush1.bf16.msra.mxu1 %v3265_v46  ;;  %v3323_v46 = vld [vmem:[#allocation9 + $0xf0] ss:$20 sps:$4 sm:$0xff]  }
 0x34b   : > { %v1371_v50 = vpop.xlane.xlu1 %1370  ;;  %v1424_v11 = vsel %vm1423_vm0, %v1422_v0, %v1417_v5  ;;  %1136 = vmatprep.subr.bf16.mxu1 %v3266_v48  ;;  %v3280_v0 = vld [vmem:[#allocation8 + $0xa8] ss:$16 sps:$4 sm:$0xff]  }
 0x34c   : > { %v1373_v49 = vpop.xlane.xlu0 %1372  ;;  %v1432_v61 = vrot.slane %v1371_v50, %v1421_v59  ;;  %v3269_v50 = vld [vmem:[#allocation8 + $0x4c] ss:$16 sps:$4 sm:$0xff]   ;;  %v3283_v5 = vld [vmem:[#allocation8 + $0xc8] ss:$16 sps:$4 sm:$0xff]  }
 0x34d   : > { %v1437_v2 = vrot.slane %v1373_v49, %v1416_v47  ;;  %v3268_v49 = vld [vmem:[#allocation8 + $0x28] ss:$16 sps:$4 sm:$0xff]  }
 0x34e   : > { %v1433_v7 = vsel %vm1423_vm0, %v1432_v61, %v1428_v63  ;;  %1137 = vmatpush1.bf16.msra.mxu1 %v3268_v49  ;;  %v4173_v63 = vsub.s32 2, %v4094_v8  ;;  %v3326_v48 = vld [vmem:[#allocation9 + $0xf8] ss:$20 sps:$4 sm:$0xff]   ;;  %v3331_v49 = vld [vmem:[#allocation9 + $0x11c] ss:$20 sps:$4 sm:$0xff]  }
 0x34f   : > { %v1375_v53 = vpop.xlane.xlu1 %1374  ;;  %v1489_v15 = vsel %vm1488_vm1, %v1433_v7, %v1424_v11  ;;  %1138 = vmatprep.subr.bf16.mxu1 %v3269_v50  ;;  %v3284_v7 = vld [vmem:[#allocation8 + $0xec] ss:$16 sps:$4 sm:$0xff]   ;;  %v3286_v11 = vld [vmem:[#allocation8 + $0xe8] ss:$16 sps:$4 sm:$0xff]  }
 0x350   : > { %v1381_v52 = vpop.xlane.xlu0 %1380  ;;  %v1441_v62 = vrot.slane %v1375_v53, %v1421_v59  ;;  %v3329_v50 = vld [vmem:[#allocation9 + $0x118] ss:$20 sps:$4 sm:$0xff]  }
 0x351   : > { %v1455_v22 = vrot.slane %v1381_v52, %v1416_v47  ;;  %v3271_v52 = vld [vmem:[#allocation8 + $0x48] ss:$16 sps:$4 sm:$0xff]  }
 0x352   : > { %v1442_v10 = vsel %vm1423_vm0, %v1441_v62, %v1437_v2  ;;  %1139 = vmatpush1.bf16.msra.mxu1 %v3271_v52  ;;  %v4170_v62 = vsub.s32 1, %v4094_v8  ;;  %v3334_v52 = vld [vmem:[#allocation9 + $0x124] ss:$20 sps:$4 sm:$0xff]  }
 0x353   : > { %v1383_v57 = vpop.xlane.xlu1 %1382  ;;  %v1491_v18 = vsel %vm1490_vm2, %v1442_v10, %v1489_v15  ;;  %v1563_v10 = vsub.s32 4, %v4094_v8  ;;  %v3289_v15 = vld [vmem:[#allocation9 + $0x4] ss:$20 sps:$4 sm:$0xff]  }
 0x354   : > { %v1377_v55 = vpop.xlane.xlu0 %1376  ;;  %v1459_v16 = vrot.slane %v1383_v57, %v1421_v59  ;;  %v3275_v57 = vld [vmem:[#allocation8 + $0x8c] ss:$16 sps:$4 sm:$0xff]   ;;  %1966 = vmatprep.subr.bf16.mxu0 %v3289_v15 }
 0x355   : > { %v1446_v9 = vrot.slane %v1377_v55, %v1416_v47  ;;  %v3272_v55 = vld [vmem:[#allocation8 + $0x6c] ss:$16 sps:$4 sm:$0xff]  }
 0x356   : > { %v1460_v28 = vsel %vm1423_vm0, %v1459_v16, %v1455_v22  ;;  %1140 = vmatprep.subr.bf16.mxu1 %v3272_v55  ;;  %v3292_v16 = vld [vmem:[#allocation9 + $0xc] ss:$20 sps:$4 sm:$0xff]   ;;  %v3337_v55 = vld [vmem:[#allocation6 + $0x4] ss:$12 sps:$4 sm:$0xff]  }
 0x357   : > { %v1379_v60 = vpop.xlane.xlu1 %1378  ;;  %1141 = vmatpush1.bf16.msra.mxu1 %v3274_v56  ;;  %v3295_v22 = vld [vmem:[#allocation9 + $0x2c] ss:$20 sps:$4 sm:$0xff]   ;;  %v3767_v56 = vmov 0.0  }
 0x358   : > { %v1385_v58 = vpop.xlane.xlu0 %1384  ;;  %v1450_v1 = vrot.slane %v1379_v60, %v1421_v59  ;;  %1142 = vmatprep.subr.bf16.mxu1 %v3275_v57 }
 0x359   : > { %v1464_v20 = vrot.slane %v1385_v58, %v1416_v47  ;;  %v3277_v58 = vld [vmem:[#allocation8 + $0x88] ss:$16 sps:$4 sm:$0xff]  }
 0x35a   : > { %v1451_v12 = vsel %vm1423_vm0, %v1450_v1, %v1446_v9  ;;  %v3281_v1 = vld [vmem:[#allocation8 + $0xcc] ss:$16 sps:$4 sm:$0xff]  }
 0x35b   : > { %v1387_v6 = vpop.xlane.xlu1 %1386  ;;  %v1493_v23 = vsel %vm1492_vm3, %v1451_v12, %v1491_v18  ;;  %1143 = vmatpush1.bf16.msra.mxu1 %v3277_v58  ;;  %v3290_v18 = vld [vmem:[#allocation9 + $0x8] ss:$20 sps:$4 sm:$0xff]  }
 0x35c   : > { %v1389_v4 = vpop.xlane.xlu0 %1388  ;;  %v1468_v14 = vrot.slane %v1387_v6, %v1421_v59  ;;  %v1495_v33 = vsel %vm1494_vm4, %v1460_v28, %v1493_v23  ;;  %v3298_v23 = vld [vmem:[#allocation9 + $0x34] ss:$20 sps:$4 sm:$0xff]   ;;  %v3304_v28 = vld [vmem:[#allocation9 + $0x5c] ss:$20 sps:$4 sm:$0xff]  }
 0x35d   : > { %v1473_v24 = vrot.slane %v1389_v4, %v1416_v47  ;;  %v1552_v4 = vsub.s32 3, %v4094_v8 }
 0x35e   : > { %v1469_v26 = vsel %vm1423_vm0, %v1468_v14, %v1464_v20  ;;  %v1574_v14 = vsub.s32 5, %v4094_v8 }
 0x35f   : > { %v1391_v17 = vpop.xlane.xlu1 %1390  ;;  %v1497_v34 = vsel %vm1496_vm5, %v1469_v26, %v1495_v33  ;;  %v1596_v26 = vsub.s32 7, %v4094_v8  ;;  %v3310_v33 = vld [vmem:[#allocation9 + $0x84] ss:$20 sps:$4 sm:$0xff]  }
 0x360   : > { %v1477_v21 = vrot.slane %v1391_v17, %v1421_v59  ;;  %v1393_v25 = vpop.xlane.xlu0 %1392  ;;  %v3287_v17 = vld [vmem:[#allocation9] ss:$20 sps:$4 sm:$0xff]  }
 0x361   : > { %v1482_v31 = vrot.slane %v1393_v25, %v1416_v47  ;;  %v3278_v47 = vld [vmem:[#allocation8 + $0xac] ss:$16 sps:$4 sm:$0xff]   ;;  %1967 = vmatpush1.bf16.msra.mxu0 %v3287_v17  ;;  %v3296_v25 = vld [vmem:[#allocation9 + $0x30] ss:$20 sps:$4 sm:$0xff]  }
 0x362   : > { %v1478_v29 = vsel %vm1423_vm0, %v1477_v21, %v1473_v24  ;;  %1144 = vmatprep.subr.bf16.mxu1 %v3278_v47  ;;  %v1585_v21 = vsub.s32 6, %v4094_v8  ;;  %v3293_v24 = vld [vmem:[#allocation9 + $0x28] ss:$20 sps:$4 sm:$0xff]   ;;  %1968 = vmatprep.subr.bf16.mxu0 %v3295_v22  ;;  %v3305_v8 = vld [vmem:[#allocation9 + $0x78] ss:$20 sps:$4 sm:$0xff]  }
 0x363   : > { %v1395_v30 = vpop.xlane.xlu1 %1394  ;;  %v1499_v36 = vsel %vm1498_vm6, %v1478_v29, %v1497_v34  ;;  %1145 = vmatpush1.bf16.msra.mxu1 %v3280_v0  ;;  %v3299_v29 = vld [vmem:[#allocation9 + $0x50] ss:$20 sps:$4 sm:$0xff]   ;;  %v3308_v34 = vld [vmem:[#allocation9 + $0x80] ss:$20 sps:$4 sm:$0xff]   ;;  %v806_v47 = vld [vmem:[#allocation3 + $0x8] sm:$0xff] }
 0x364   : > { %v1486_v32 = vrot.slane %v1395_v30, %v1421_v59  ;;  %1146 = vmatprep.subr.bf16.mxu1 %v3281_v1  ;;  %v3302_v30 = vld [vmem:[#allocation9 + $0x58] ss:$20 sps:$4 sm:$0xff]   ;;  %v807_v0 = vld [vmem:[#allocation3 + $0x10] sm:$0xff] }
 0x365   : > { %1969 = vmatpush1.bf16.msra.mxu0 %v3293_v24  ;;  %v808_v1 = vld [vmem:[#allocation3 + $0x18] sm:$0xff] }
 0x366   : > { %v1487_v35 = vsel %vm1423_vm0, %v1486_v32, %v1482_v31  ;;  %1970 = vmatprep.subr.bf16.mxu0 %v3301_v27  ;;  %v3307_v32 = vld [vmem:[#allocation9 + $0x7c] ss:$20 sps:$4 sm:$0xff]  }
 0x367   : > { %v1501_v37 = vsel %vm1500_vm7, %v1487_v35, %v1499_v36  ;;  %1147 = vmatpush1.bf16.msra.mxu1 %v3283_v5  ;;  %v821_v35 = vld [vmem:[%s4052_s26] sm:$0xff] }
 0x368   : > { %v1503_v38 = vsel %vm1397_vm8, %v1501_v37, -1e+10  ;;  %1148 = vmatprep.subr.bf16.mxu1 %v3284_v7  ;;  %v3313_v36 = vld [vmem:[#allocation9 + $0xa4] ss:$20 sps:$4 sm:$0xff]   ;;  %v3316_v37 = vld [vmem:[#allocation9 + $0xac] ss:$20 sps:$4 sm:$0xff]  }
 0x369   : > { %v1505_v39 = vsel %vm1504_vm9, %v1503_v38, -inf  ;;  %1971 = vmatpush1.bf16.msra.mxu0 %v3299_v29 }
 0x36a   : > { %1506 = vmax.xlane.f32.xlu0 %v1505_v39  ;;  %1972 = vmatprep.subr.bf16.mxu0 %v3307_v32  ;;  %v3314_v39 = vld [vmem:[#allocation9 + $0xa8] ss:$20 sps:$4 sm:$0xff]  }
 0x36b   : > { %1149 = vmatpush1.bf16.msra.mxu1 %v3286_v11  ;;  %v810_v11 = vld [vmem:[#allocation3 + $0x28] sm:$0xff] }
 0x36c   : > { %2007 = vmatprep.subr.bf16.mxu1 %v3292_v16 }
 0x36d   : > { %1973 = vmatpush1.bf16.msra.mxu0 %v3305_v8 }
 0x36e   : > { %1167 = vmatmul.mubr.bf16.vlgmr.msra.gmra.mrb[0].mxu1 %v4089_v3  ;;  %1974 = vmatprep.subr.bf16.mxu0 %v3313_v36 }
 0x36f   : > { %2008 = vmatpush1.bf16.msra.mxu1 %v3290_v18  ;;  %2039 = vmatprep.mubr.bf16.mxu1 %v3765_v51 }
 0x370   : > { %2009 = vmatprep.subr.bf16.mxu1 %v3298_v23 }
 0x373   : > { %2010 = vmatpush1.bf16.msra.mxu1 %v3296_v25 }
 0x374   : > { %2011 = vmatprep.subr.bf16.mxu1 %v3304_v28  ;;  %v813_v28 = vld [vmem:[#allocation3 + $0x40] sm:$0xff] }
 0x377   : > { %2012 = vmatpush1.bf16.msra.mxu1 %v3302_v30  ;;  %v814_v30 = vld [vmem:[#allocation3 + $0x48] sm:$0xff] }
 0x378   : > { %2013 = vmatprep.subr.bf16.mxu1 %v3310_v33 }
 0x37b   : > { %2014 = vmatpush1.bf16.msra.mxu1 %v3308_v34 }
 0x37c   : > { %2015 = vmatprep.subr.bf16.mxu1 %v3316_v37 }
 0x37f   : > { %2016 = vmatpush1.bf16.msra.mxu1 %v3314_v39 }
 0x3f7   : > { %v1507_v40 = vpop.xlane.xlu0 %1506 }
 0x3f8   : > { %v1508_v41 = vsub.f32 %v1503_v38, %v1507_v40  ;;  %v3311_v38 = vld [vmem:[#allocation9 + $0xa0] ss:$20 sps:$4 sm:$0xff]  }
 0x3f9   : > { %1975 = vmatpush1.bf16.msra.mxu0 %v3311_v38  ;;  %v3319_v40 = vld [vmem:[#allocation9 + $0xcc] ss:$20 sps:$4 sm:$0xff]  }
 0x3fa   : > { %v1509_v42 = vmul.f32 1.442695, %v1508_v41  ;;  %v3322_v41 = vld [vmem:[#allocation9 + $0xd4] ss:$20 sps:$4 sm:$0xff]   ;;  %1976 = vmatprep.subr.bf16.mxu0 %v3319_v40 }
 0x3fb   : > { %2017 = vmatprep.subr.bf16.mxu1 %v3322_v41  ;;  %v815_v40 = vld [vmem:[#allocation3 + $0x50] sm:$0xff] }
 0x3fc   : > { %3463 = vpow2.f32 %v1509_v42  ;;  %v3317_v42 = vld [vmem:[#allocation9 + $0xc8] ss:$20 sps:$4 sm:$0xff]  }
 0x3fd   : > { %1977 = vmatpush1.bf16.msra.mxu0 %v3317_v42  ;;  %v816_v42 = vld [vmem:[#allocation3 + $0x58] sm:$0xff] }
 0x406   : > { %v3464_v43 = vpop.eup %3463 }
 0x407   : > { %v1511_v44 = vsel %vm1504_vm9, %v3464_v43, 0.0 }
 0x408   : > { %1512 = vadd.xlane.f32.xlu1 %v1511_v44  ;;  %v3325_v44 = vld [vmem:[#allocation9 + $0xf4] ss:$20 sps:$4 sm:$0xff]  }
 0x409   : > { %1978 = vmatprep.subr.bf16.mxu0 %v3325_v44 }
 0x40a   : > { %1979 = vmatpush1.bf16.msra.mxu0 %v3323_v46 }
 0x40b   : > { %1980 = vmatprep.subr.bf16.mxu0 %v3331_v49 }
 0x40e   : > { %1981 = vmatpush1.bf16.msra.mxu0 %v3329_v50 }
 0x40f   : > { %3079 = vmatprep.subr.bf16.mxu0 %v3767_v56 }
 0x495   : > { %v1513_v53 = vpop.xlane.xlu1 %1512 }
 0x496   : > { %3465 = vrcp.f32 %v1513_v53  ;;  %v3332_v53 = vld [vmem:[#allocation9 + $0x120] ss:$20 sps:$4 sm:$0xff]  }
 0x4a0   : > { %v3466_v59 = vpop.eup %3465 }
 0x4a1   : > { %v4161_v60 = vmul.f32 %v3466_v59, %v3464_v43  ;;  %v3320_v43 = vld [vmem:[#allocation9 + $0xd0] ss:$20 sps:$4 sm:$0xff]  }
 0x4a2   : > { %2018 = vmatpush1.bf16.msra.mxu1 %v3320_v43 }
 0x4a3   : > { %1516 = vst.msk [vmem:[%s591_s29] sm:$0xff] %vm1504_vm9, %v4161_v60  ;;  %v1520_v61 = vrot.slane %v4161_v60, %v4103_v19  ;;  %v1531_v2 = vrot.slane %v4161_v60, %v4170_v62  ;;  %v1542_v6 = vrot.slane %v4161_v60, %v4173_v63  ;;  %v1553_v9 = vrot.slane %v4161_v60, %v1552_v4 }
 0x4a4   : > { %v1564_v12 = vrot.slane %v4161_v60, %v1563_v10  ;;  %v1575_v20 = vrot.slane %v4161_v60, %v1574_v14  ;;  %v1586_v3 = vrot.slane %v4161_v60, %v1585_v21  ;;  %v1597_v31 = vrot.slane %v4161_v60, %v1596_v26  ;;  %2019 = vmatprep.subr.bf16.mxu1 %v3328_v45  ;;  %v809_v10 = vld [vmem:[#allocation3 + $0x20] sm:$0xff]  ;;  %v812_v21 = vld [vmem:[#allocation3 + $0x38] sm:$0xff] }
 0x4a5   : > { %1526 = vbcast.lane.b32.xlu1 %v1520_v61, 264  ;;  %1522 = vbcast.lane.b32.xlu0 %v1520_v61, 256  ;;  %v805_v61 = vld [vmem:[#allocation3] sm:$0xff] }
 0x4a6   : > { %2020 = vmatpush1.bf16.msra.mxu1 %v3326_v48 }
 0x4a7   : > { %2021 = vmatprep.subr.bf16.mxu1 %v3334_v52 }
 0x4a9   : > { %1533 = vbcast.lane.b32.xlu1 %v1531_v2, 256  ;;  %1544 = vbcast.lane.b32.xlu0 %v1542_v6, 256 }
 0x4aa   : > { %2022 = vmatpush1.bf16.msra.mxu1 %v3332_v53 }
 0x4ab   : > { %2344 = vmatprep.subr.bf16.mxu1 %v3337_v55 }
 0x4ad   : > { %1537 = vbcast.lane.b32.xlu1 %v1531_v2, 264  ;;  %1555 = vbcast.lane.b32.xlu0 %v1553_v9, 256 }
 0x4b1   : > { %1548 = vbcast.lane.b32.xlu1 %v1542_v6, 264  ;;  %1566 = vbcast.lane.b32.xlu0 %v1564_v12, 256 }
 0x4b5   : > { %1559 = vbcast.lane.b32.xlu1 %v1553_v9, 264  ;;  %1577 = vbcast.lane.b32.xlu0 %v1575_v20, 256 }
 0x4b9   : > { %1570 = vbcast.lane.b32.xlu1 %v1564_v12, 264  ;;  %1588 = vbcast.lane.b32.xlu0 %v1586_v3, 256 }
 0x4bd   : > { %1581 = vbcast.lane.b32.xlu1 %v1575_v20, 264  ;;  %1599 = vbcast.lane.b32.xlu0 %v1597_v31, 256  ;;  %v811_v20 = vld [vmem:[#allocation3 + $0x30] sm:$0xff] }
 0x4c1   : > { %1592 = vbcast.lane.b32.xlu1 %v1586_v3, 264  ;;  %826 = vperm.xlu0 %3238, %v821_v35  }
 0x4c5   : > { %1603 = vbcast.lane.b32.xlu1 %v1597_v31, 264 }
 0x517   : > { %v1527_v57 = vpop.permute.xlu1 %1526  ;;  %v1523_v58 = vpop.permute.xlu0 %1522 }
 0x518   : > { %v1606_v4 = vmul.f32 %v1527_v57, %v806_v47  ;;  %v1605_v5 = vmul.f32 %v1523_v58, %v805_v61  ;;  %v817_v57 = vld [vmem:[#allocation3 + $0x60] sm:$0xff]  ;;  %v818_v58 = vld [vmem:[#allocation3 + $0x68] sm:$0xff] }
 0x51a   : > { %v1621_v16 = vadd.f32 %v1606_v4, %v1605_v5  ;;  %v819_v4 = vld [vmem:[#allocation3 + $0x70] sm:$0xff] }
 0x51b   : > { %v1534_v59 = vpop.permute.xlu1 %1533  ;;  %v1545_v60 = vpop.permute.xlu0 %1544 }
 0x51c   : > { %v1607_v7 = vmul.f32 %v1534_v59, %v807_v0  ;;  %v1609_v17 = vmul.f32 %v1545_v60, %v809_v10  ;;  %v1622_v25 = vrot.slane %v1621_v16, 4 }
 0x51e   : > { %v1623_v34 = vadd.f32 %v1622_v25, %v1621_v16 }
 0x51f   : > { %v1538_v2 = vpop.permute.xlu1 %1537  ;;  %v1556_v6 = vpop.permute.xlu0 %1555 }
 0x520   : > { %v1608_v9 = vmul.f32 %v1538_v2, %v808_v1  ;;  %v1611_v3 = vmul.f32 %v1556_v6, %v811_v20  ;;  %v1624_v46 = vrot.slane %v1623_v34, 2 }
 0x522   : > { %v1628_v12 = vadd.f32 %v1608_v9, %v1607_v7  ;;  %v1625_v61 = vadd.f32 %v1624_v46, %v1623_v34  ;;  %v820_v9 = vld [vmem:[#allocation3 + $0x78] sm:$0xff] }
 0x523   : > { %v1549_v14 = vpop.permute.xlu1 %1548  ;;  %v1567_v15 = vpop.permute.xlu0 %1566 }
 0x524   : > { %v1610_v18 = vmul.f32 %v1549_v14, %v810_v11  ;;  %v1629_v22 = vrot.slane %v1628_v12, 4  ;;  %v1613_v35 = vmul.f32 %v1567_v15, %v813_v28 }
 0x526   : > { %v1635_v23 = vadd.f32 %v1610_v18, %v1609_v17  ;;  %v1630_v31 = vadd.f32 %v1629_v22, %v1628_v12  ;;  %v1626_v17 = vrot.slane %v1625_v61, 1 }
 0x527   : > { %v1560_v24 = vpop.permute.xlu1 %1559  ;;  %v1578_v29 = vpop.permute.xlu0 %1577 }
 0x528   : > { %v1636_v26 = vrot.slane %v1635_v23, 4  ;;  %v1612_v27 = vmul.f32 %v1560_v24, %v812_v21  ;;  %v1631_v38 = vrot.slane %v1630_v31, 2  ;;  %v1615_v50 = vmul.f32 %v1578_v29, %v815_v40 }
 0x529   : > { %v1627_v29 = vadd.f32 %v1626_v17, %v1625_v61  ;;  %v3339_v17 = vld [vmem:[#allocation6 + $0x18] ss:$12 sps:$4 sm:$0xff]  }
 0x52a   : > { %v1642_v32 = vadd.f32 %v1612_v27, %v1611_v3  ;;  %v1637_v33 = vadd.f32 %v1636_v26, %v1635_v23  ;;  %v1632_v53 = vadd.f32 %v1631_v38, %v1630_v31 }
 0x52b   : > { %v1571_v8 = vpop.permute.xlu1 %1570  ;;  %v1589_v44 = vpop.permute.xlu0 %1588 }
 0x52c   : > { %v1643_v36 = vrot.slane %v1642_v32, 4  ;;  %v1614_v37 = vmul.f32 %v1571_v8, %v814_v30  ;;  %v1638_v43 = vrot.slane %v1637_v33, 2  ;;  %v1617_v2 = vmul.f32 %v1589_v44, %v817_v57 }
 0x52d   : > { %v1633_v10 = vrot.slane %v1632_v53, 1 }
 0x52e   : > { %v1644_v39 = vadd.f32 %v1643_v36, %v1642_v32  ;;  %v1649_v41 = vadd.f32 %v1614_v37, %v1613_v35  ;;  %v1639_v59 = vadd.f32 %v1638_v43, %v1637_v33 }
 0x52f   : > { %v1582_v45 = vpop.permute.xlu1 %1581  ;;  %v1600_v5 = vpop.permute.xlu0 %1599  ;;  %v1634_v25 = vadd.f32 %v1633_v10, %v1632_v53  ;;  %v3335_v10 = vld [vmem:[#allocation6] ss:$12 sps:$4 sm:$0xff]  }
 0x530   : > { %v1645_v48 = vrot.slane %v1644_v39, 2  ;;  %v1650_v49 = vrot.slane %v1649_v41, 4  ;;  %v1616_v52 = vmul.f32 %v1582_v45, %v816_v42  ;;  %v1640_v12 = vrot.slane %v1639_v59, 1 }
 0x531   : > { %v1619_v20 = vmul.f32 %v1600_v5, %v819_v4  ;;  %v1678_v34 = vpack.c.bf16 %v1634_v25, %v1634_v25  ;;  %v3347_v25 = vld [vmem:[#allocation6 + $0x48] ss:$12 sps:$4 sm:$0xff]  }
 0x532   : > { %v1651_v55 = vadd.f32 %v1650_v49, %v1649_v41  ;;  %v1656_v60 = vadd.f32 %v1616_v52, %v1615_v50  ;;  %v1646_v0 = vadd.f32 %v1645_v48, %v1644_v39  ;;  %v1641_v26 = vadd.f32 %v1640_v12, %v1639_v59  ;;  %v3338_v12 = vld [vmem:[#allocation9 + $0x10] ss:$20 sps:$4 sm:$0xff]  }
 0x533   : > { %v1593_v47 = vpop.permute.xlu1 %1592  ;;  %v1677_v39 = vpack.c.bf16 %v1627_v29, %v1627_v29  ;;  %v1742_v44 = vunpack.c.l.b16 %v1678_v34  ;;  %v3357_v29 = vld [vmem:[#allocation6 + $0x7c] ss:$12 sps:$4 sm:$0xff]   ;;  %v3365_v34 = vld [vmem:[#allocation6 + $0xac] ss:$12 sps:$4 sm:$0xff]  }
 0x534   : > { %v1652_v1 = vrot.slane %v1651_v55, 2  ;;  %v1657_v6 = vrot.slane %v1656_v60, 4  ;;  %v1618_v7 = vmul.f32 %v1593_v47, %v818_v58  ;;  %v1647_v18 = vrot.slane %v1646_v0, 1 }
 0x535   : > { %v1679_v36 = vpack.c.bf16 %v1641_v26, %v1641_v26  ;;  %v1741_v50 = vunpack.c.l.b16 %v1677_v39  ;;  %v3353_v26 = vld [vmem:[#allocation6 + $0x64] ss:$12 sps:$4 sm:$0xff]   ;;  %v3367_v39 = vld [vmem:[#allocation6 + $0xc0] ss:$12 sps:$4 sm:$0xff]  }
 0x536   : > { %v1653_v11 = vadd.f32 %v1652_v1, %v1651_v55  ;;  %v1658_v14 = vadd.f32 %v1657_v6, %v1656_v60  ;;  %v1663_v15 = vadd.f32 %v1618_v7, %v1617_v2  ;;  %v1648_v30 = vadd.f32 %v1647_v18, %v1646_v0  ;;  %v3342_v18 = vld [vmem:[#allocation9 + $0x38] ss:$20 sps:$4 sm:$0xff]  }
 0x537   : > { %v1604_v16 = vpop.permute.xlu1 %1603  ;;  %v1743_v48 = vunpack.c.l.b16 %v1679_v36  ;;  %v1749_v58 = vsel %vm1488_vm1, %v1742_v44, %v1741_v50  ;;  %v824_v2 = vadd.s32 128, %v4135_v54  ;;  %v3366_v36 = vld [vmem:[#allocation9 + $0x128] ss:$20 sps:$4 sm:$0xff]   ;;  %v3376_v44 = vld [vmem:[#allocation6 + $0x20] ss:$12 sps:$4 sm:$0xff]  }
 0x538   : > { %v1620_v21 = vmul.f32 %v1604_v16, %v820_v9  ;;  %v1654_v22 = vrot.slane %v1653_v11, 1  ;;  %v1659_v23 = vrot.slane %v1658_v14, 2  ;;  %v1664_v24 = vrot.slane %v1663_v15, 4  ;;  %v3385_v50 = vld [vmem:[#allocation6 + $0x110] ss:$12 sps:$4 sm:$0xff]  }
 0x539   : > { %v1680_v40 = vpack.c.bf16 %v1648_v30, %v1648_v30  ;;  %v1750_v47 = vsel %vm1490_vm2, %v1743_v48, %v1749_v58  ;;  %v3355_v30 = vld [vmem:[#allocation6 + $0x78] ss:$12 sps:$4 sm:$0xff]   ;;  %v3387_v58 = vld [vmem:[#allocation6 + $0x120] ss:$12 sps:$4 sm:$0xff]  }
 0x53a   : > { %v1670_v3 = vadd.f32 %v1620_v21, %v1619_v20  ;;  %v1660_v27 = vadd.f32 %v1659_v23, %v1658_v14  ;;  %v1665_v28 = vadd.f32 %v1664_v24, %v1663_v15  ;;  %v1655_v32 = vadd.f32 %v1654_v22, %v1653_v11  ;;  %v3341_v15 = vld [vmem:[#allocation6 + $0x1c] ss:$12 sps:$4 sm:$0xff]   ;;  %v3345_v20 = vld [vmem:[#allocation6 + $0x34] ss:$12 sps:$4 sm:$0xff]   ;;  %v3349_v24 = vld [vmem:[#allocation6 + $0x4c] ss:$12 sps:$4 sm:$0xff]  }
 0x53b   : > { %v1744_v52 = vunpack.c.l.b16 %v1680_v40  ;;  %v3769_v21 = vmov 1.0|1.0   ;;  %v3343_v22 = vld [vmem:[#allocation6 + $0x30] ss:$12 sps:$4 sm:$0xff]   ;;  %v3346_v23 = vld [vmem:[#allocation9 + $0x60] ss:$20 sps:$4 sm:$0xff]  }
 0x53c   : > { %v1671_v31 = vrot.slane %v1670_v3, 4  ;;  %v1661_v33 = vrot.slane %v1660_v27, 1  ;;  %v1666_v8 = vrot.slane %v1665_v28, 2  ;;  %v1681_v42 = vpack.c.bf16 %v1655_v32, %v1655_v32  ;;  %v3361_v32 = vld [vmem:[#allocation6 + $0x94] ss:$12 sps:$4 sm:$0xff]  }
 0x53d   : > { %v1751_v0 = vsel %vm1492_vm3, %v1744_v52, %v1750_v47  ;;  %v3371_v40 = vld [vmem:[#allocation6 + $0x8] ss:$12 sps:$4 sm:$0xff]   ;;  %v3381_v48 = vld [vmem:[#allocation6 + $0x38] ss:$12 sps:$4 sm:$0xff]   ;;  %v3395_v47 = vld [vmem:[#allocation6 + $0x140] ss:$12 sps:$4 sm:$0xff]  }
 0x53e   : > { %v1672_v35 = vadd.f32 %v1671_v31, %v1670_v3  ;;  %v1662_v37 = vadd.f32 %v1661_v33, %v1660_v27  ;;  %v1667_v38 = vadd.f32 %v1666_v8, %v1665_v28  ;;  %v1745_v55 = vunpack.c.l.b16 %v1681_v42  ;;  %v3350_v3 = vld [vmem:[#allocation9 + $0x88] ss:$20 sps:$4 sm:$0xff]   ;;  %v3351_v27 = vld [vmem:[#allocation6 + $0x60] ss:$12 sps:$4 sm:$0xff]   ;;  %v3354_v28 = vld [vmem:[#allocation9 + $0xb0] ss:$20 sps:$4 sm:$0xff]  }
 0x53f   : > { %v3358_v31 = vld [vmem:[#allocation9 + $0xd8] ss:$20 sps:$4 sm:$0xff]   ;;  %v3359_v33 = vld [vmem:[#allocation6 + $0x90] ss:$12 sps:$4 sm:$0xff]   ;;  %v3362_v8 = vld [vmem:[#allocation9 + $0x100] ss:$20 sps:$4 sm:$0xff]  }
 0x540   : > { %v1673_v41 = vrot.slane %v1672_v35, 2  ;;  %v1668_v43 = vrot.slane %v1667_v38, 1  ;;  %v1682_v45 = vpack.c.bf16 %v1662_v37, %v1662_v37  ;;  %v1752_v6 = vsel %vm1494_vm4, %v1745_v55, %v1751_v0  ;;  %v4198_v4 = vpop.permute.xlu0 %826  ;;  %v3369_v37 = vld [vmem:[#allocation6 + $0xc4] ss:$12 sps:$4 sm:$0xff]   ;;  %v3375_v42 = vld [vmem:[#allocation6 + $0xe0] ss:$12 sps:$4 sm:$0xff]  }
 0x541   : > { %vm829_vm10 = vcmp.eq.s32.totalorder %v824_v2, %v4198_v4  ;;  %v3382_v52 = vld [vmem:[#allocation6 + $0x108] ss:$12 sps:$4 sm:$0xff]   ;;  %v3389_v55 = vld [vmem:[#allocation6 + $0x124] ss:$12 sps:$4 sm:$0xff]   ;;  %v3396_v0 = vld [vmem:[#allocation6 + $0x80] ss:$12 sps:$4 sm:$0xff]   ;;  %vm828_vm13 = vcmp.eq.s32.totalorder %v4135_v54, %v4198_v4 }
 0x542   : > { %v1674_v46 = vadd.f32 %v1673_v41, %v1672_v35  ;;  %v1669_v49 = vadd.f32 %v1668_v43, %v1667_v38  ;;  %v1746_v59 = vunpack.c.l.b16 %v1682_v45  ;;  %vm4208_vm11 = vmpackc.low %vm829_vm10, %vm829_vm10  ;;  %v3363_v35 = vld [vmem:[#allocation6 + $0xa8] ss:$12 sps:$4 sm:$0xff]   ;;  %v3372_v43 = vld [vmem:[#allocation6 + $0xd8] ss:$12 sps:$4 sm:$0xff]  }
 0x543   : > { %v3370_v38 = vld [vmem:[#allocation6 + $0xc8] ss:$12 sps:$4 sm:$0xff]   ;;  %v3380_v45 = vld [vmem:[#allocation6 + $0xf8] ss:$12 sps:$4 sm:$0xff]   ;;  %vm2966_vm14 = vmpackc.low %vm828_vm13, %vm828_vm13 }
 0x544   : > { %v1675_v53 = vrot.slane %v1674_v46, 1  ;;  %v1683_v57 = vpack.c.bf16 %v1669_v49, %v1669_v49  ;;  %v1753_v7 = vsel %vm1496_vm5, %v1746_v59, %v1752_v6  ;;  %v3374_v41 = vld [vmem:[#allocation6 + $0xdc] ss:$12 sps:$4 sm:$0xff]   ;;  %v3384_v49 = vld [vmem:[#allocation6 + $0x10c] ss:$12 sps:$4 sm:$0xff]  }
 0x545   : > { %v3391_v59 = vld [vmem:[#allocation6 + $0x68] ss:$12 sps:$4 sm:$0xff]   ;;  %v3400_v2 = vld [vmem:[#allocation6 + $0x158] ss:$12 sps:$4 sm:$0xff]   ;;  %v3397_v6 = vld [vmem:[#allocation6 + $0x150] ss:$12 sps:$4 sm:$0xff]  }
 0x546   : > { %v1676_v60 = vadd.f32 %v1675_v53, %v1674_v46  ;;  %v1747_v61 = vunpack.c.l.b16 %v1683_v57  ;;  %v3377_v46 = vld [vmem:[#allocation6 + $0xf0] ss:$12 sps:$4 sm:$0xff]   ;;  %v3390_v57 = vld [vmem:[#allocation6 + $0x128] ss:$12 sps:$4 sm:$0xff]  }
 0x547   : > { %v3386_v53 = vld [vmem:[#allocation6 + $0x50] ss:$12 sps:$4 sm:$0xff]  }
 0x548   : > { %v1684_v1 = vpack.c.bf16 %v1676_v60, %v1676_v60  ;;  %v1754_v9 = vsel %vm1498_vm6, %v1747_v61, %v1753_v7  ;;  %v3394_v60 = vld [vmem:[#allocation6 + $0x13c] ss:$12 sps:$4 sm:$0xff]   ;;  %v3392_v61 = vld [vmem:[#allocation6 + $0x138] ss:$12 sps:$4 sm:$0xff]  }
 0x549   : > { %v3404_v7 = vld [vmem:[#allocation6 + $0x16c] ss:$12 sps:$4 sm:$0xff]   ;;  %v3418_v54 = vld [vmem:[#allocation11 + $0x34] ss:$8 sps:$4 sm:$0xff]  }
 0x54a   : > { %v1748_v5 = vunpack.c.l.b16 %v1684_v1  ;;  %v3399_v1 = vld [vmem:[#allocation6 + $0x154] ss:$12 sps:$4 sm:$0xff]   ;;  %v3416_v4 = vld [vmem:[#allocation11 + $0x30] ss:$8 sps:$4 sm:$0xff]  }
 0x54c   : > { %v1755_v11 = vsel %vm1500_vm7, %v1748_v5, %v1754_v9  ;;  %v3401_v5 = vld [vmem:[#allocation6 + $0x98] ss:$12 sps:$4 sm:$0xff]   ;;  %v3405_v9 = vld [vmem:[#allocation6 + $0x170] ss:$12 sps:$4 sm:$0xff]  }
 0x54d   : > { %v4204_v14 = vpack.c.b16 %v1755_v11, %v1755_v11 }
 0x54f   : > { %1999 = vmatmul.mubr.bf16.vlgmr.msra.gmra.mrb[4].mxu0 %v4204_v14  ;;  %2040 = vmatmul.mubr.bf16.vlgmr.msra.gmra.mrb[4].mxu1 %v4204_v14 }
 0x550   : > { %3080 = vmatpush3.bf16.msra.mxu0 %v3338_v12  ;;  %2345 = vmatpush1.bf16.msra.mxu1 %v3335_v10  ;;  %v4227_v10 = vpop.f32.mrb[0].mxu1 }
 0x551   : > { %3081 = vmatprep.subr.bf16.mxu0 %v3767_v56  ;;  %2346 = vmatprep.subr.bf16.mxu1 %v3341_v15  ;;  %v4229_v11 = vpop.f32.mrb[1].mxu1  ;;  %v3406_v15 = vld [vmem:[#allocation6 + $0xb0] ss:$12 sps:$4 sm:$0xff]  }
 0x552   : > { %3095 = vmatprep.mubr.msk.bf16.mxu0 %vm3768_vm12, %v3767_v56  ;;  %2965 = vmatprep.mubr.msk.bf16.mxu1 %vm4208_vm11, %v3769_v21  ;;  %v1172_v12 = vpop.f32.mrb[2].mxu1 }
 0x553   : > { %v1173_v16 = vpop.f32.mrb[3].mxu1 }
 0x554   : > { %3082 = vmatpush3.bf16.msra.mxu0 %v3342_v18  ;;  %2347 = vmatpush1.bf16.msra.mxu1 %v3339_v17  ;;  %v3409_v17 = vld [vmem:[#allocation11 + $0x4] ss:$8 sps:$4 sm:$0xff]   ;;  %v3407_v18 = vld [vmem:[#allocation11] ss:$8 sps:$4 sm:$0xff]  }
 0x555   : > { %3083 = vmatprep.subr.bf16.mxu0 %v3767_v56  ;;  %2348 = vmatprep.subr.bf16.mxu1 %v3345_v20  ;;  %v3412_v20 = vld [vmem:[#allocation11 + $0x14] ss:$8 sps:$4 sm:$0xff]  }
 0x558   : > { %3084 = vmatpush3.bf16.msra.mxu0 %v3346_v23  ;;  %2349 = vmatpush1.bf16.msra.mxu1 %v3343_v22  ;;  %v3410_v22 = vld [vmem:[#allocation11 + $0x10] ss:$8 sps:$4 sm:$0xff]   ;;  %v3415_v23 = vld [vmem:[#allocation11 + $0x24] ss:$8 sps:$4 sm:$0xff]  }
 0x559   : > { %3085 = vmatprep.subr.bf16.mxu0 %v3767_v56  ;;  %2350 = vmatprep.subr.bf16.mxu1 %v3349_v24  ;;  %v3413_v24 = vld [vmem:[#allocation11 + $0x20] ss:$8 sps:$4 sm:$0xff]  }
 0x55c   : > { %3086 = vmatpush3.bf16.msra.mxu0 %v3350_v3  ;;  %2351 = vmatpush1.bf16.msra.mxu1 %v3347_v25  ;;  %v3421_v25 = vld [vmem:[#allocation11 + $0x44] ss:$8 sps:$4 sm:$0xff]   ;;  %v3422_v3 = vld [vmem:[#allocation11 + $0x50] ss:$8 sps:$4 sm:$0xff]  }
 0x55d   : > { %3087 = vmatprep.subr.bf16.mxu0 %v3767_v56  ;;  %2352 = vmatprep.subr.bf16.mxu1 %v3353_v26  ;;  %v3427_v26 = vld [vmem:[#allocation11 + $0x64] ss:$8 sps:$4 sm:$0xff]  }
 0x560   : > { %3088 = vmatpush3.bf16.msra.mxu0 %v3354_v28  ;;  %2353 = vmatpush1.bf16.msra.mxu1 %v3351_v27  ;;  %v3425_v27 = vld [vmem:[#allocation11 + $0x60] ss:$8 sps:$4 sm:$0xff]   ;;  %v3430_v28 = vld [vmem:[#allocation11 + $0x74] ss:$8 sps:$4 sm:$0xff]  }
 0x561   : > { %3089 = vmatprep.subr.bf16.mxu0 %v3767_v56  ;;  %2354 = vmatprep.subr.bf16.mxu1 %v3357_v29  ;;  %v3428_v29 = vld [vmem:[#allocation11 + $0x70] ss:$8 sps:$4 sm:$0xff]  }
 0x564   : > { %3090 = vmatpush3.bf16.msra.mxu0 %v3358_v31  ;;  %2355 = vmatpush1.bf16.msra.mxu1 %v3355_v30 }
 0x565   : > { %3091 = vmatprep.subr.bf16.mxu0 %v3767_v56  ;;  %2356 = vmatprep.subr.bf16.mxu1 %v3361_v32 }
 0x568   : > { %3092 = vmatpush3.bf16.msra.mxu0 %v3362_v8  ;;  %2357 = vmatpush1.bf16.msra.mxu1 %v3359_v33 }
 0x569   : > { %3093 = vmatprep.subr.bf16.mxu0 %v3767_v56  ;;  %2358 = vmatprep.subr.bf16.mxu1 %v3365_v34  ;;  %v3379_v56 = vld [vmem:[#allocation6 + $0xf4] ss:$12 sps:$4 sm:$0xff]  }
 0x56c   : > { %3094 = vmatpush3.bf16.msra.mxu0 %v3366_v36  ;;  %2359 = vmatpush1.bf16.msra.mxu1 %v3363_v35 }
 0x56d   : > { %2360 = vmatprep.subr.bf16.mxu1 %v3369_v37  ;;  %3025 = vmatprep.subr.bf16.mxu0 %v3370_v38 }
 0x56f   : > { %3096 = vmatmul.mubr.bf16.vlgmr.msra.gmra.mrb[8].mxu0 %v4204_v14  ;;  %v3402_v14 = vld [vmem:[#allocation6 + $0x168] ss:$12 sps:$4 sm:$0xff]  }
 0x570   : > { %2361 = vmatpush1.bf16.msra.mxu1 %v3367_v39  ;;  %3026 = vmatpush3.bf16.msra.mxu0 %v3371_v40 }
 0x571   : > { %2362 = vmatprep.subr.bf16.mxu1 %v3374_v41  ;;  %3027 = vmatprep.subr.bf16.mxu0 %v3375_v42  ;;  %v1183_v41 = vld [vmem:[%s4381_s11] sm:$0x7] }
 0x572   : > { %2969 = vmatprep.mubr.msk.bf16.mxu0 %vm4208_vm11, %v3769_v21  ;;  %v2425_v42 = vld [vmem:[%s4380_s10] sm:$0x7]  ;;  %v1196_v16 = vrot.slane %v1183_v41, %v4173_v63 }
 0x574   : > { %2363 = vmatpush1.bf16.msra.mxu1 %v3372_v43  ;;  %3028 = vmatpush3.bf16.msra.mxu0 %v3376_v44  ;;  %v1188_v43 = vrot.slane %v1183_v41, %v4103_v19  ;;  %v2430_v44 = vrot.slane %v2425_v42, %v4103_v19 }
 0x575   : > { %2364 = vmatprep.subr.bf16.mxu1 %v3379_v56  ;;  %3029 = vmatprep.subr.bf16.mxu0 %v3380_v45  ;;  %v1192_v56 = vrot.slane %v1183_v41, %v4170_v62 }
 0x578   : > { %2365 = vmatpush1.bf16.msra.mxu1 %v3377_v46  ;;  %3030 = vmatpush3.bf16.msra.mxu0 %v3381_v48  ;;  %v2434_v48 = vrot.slane %v2425_v42, %v4170_v62 }
 0x579   : > { %2366 = vmatprep.subr.bf16.mxu1 %v3384_v49  ;;  %3031 = vmatprep.subr.bf16.mxu0 %v3385_v50 }
 0x57c   : > { %2367 = vmatpush1.bf16.msra.mxu1 %v3382_v52  ;;  %3032 = vmatpush3.bf16.msra.mxu0 %v3386_v53 }
 0x57d   : > { %2368 = vmatprep.subr.bf16.mxu1 %v3389_v55  ;;  %3033 = vmatprep.subr.bf16.mxu0 %v3390_v57 }
 0x580   : > { %2369 = vmatpush1.bf16.msra.mxu1 %v3387_v58  ;;  %3034 = vmatpush3.bf16.msra.mxu0 %v3391_v59  ;;  %v1200_v59 = vadd.f32 %v1188_v43, %v4100_v13 }
 0x581   : > { %2370 = vmatprep.subr.bf16.mxu1 %v3394_v60  ;;  %3035 = vmatprep.subr.bf16.mxu0 %v3395_v47 }
 0x584   : > { %2371 = vmatpush1.bf16.msra.mxu1 %v3392_v61  ;;  %3036 = vmatpush3.bf16.msra.mxu0 %v3396_v0  ;;  %v1201_v0 = vadd.f32 %v1192_v56, %v4227_v10 }
 0x585   : > { %2372 = vmatprep.subr.bf16.mxu1 %v3399_v1  ;;  %3037 = vmatprep.subr.bf16.mxu0 %v3400_v2 }
 0x588   : > { %2373 = vmatpush1.bf16.msra.mxu1 %v3397_v6  ;;  %3038 = vmatpush3.bf16.msra.mxu0 %v3401_v5 }
 0x589   : > { %2374 = vmatprep.subr.bf16.mxu1 %v3404_v7  ;;  %3039 = vmatprep.subr.bf16.mxu0 %v3405_v9 }
 0x58c   : > { %2375 = vmatpush1.bf16.msra.mxu1 %v3402_v14  ;;  %3040 = vmatpush3.bf16.msra.mxu0 %v3406_v15 }
 0x58d   : > { %2564 = vmatprep.subr.bf16.mxu0 %v3409_v17  ;;  %v2438_v17 = vrot.slane %v2425_v42, %v4173_v63 }
 0x58f   : > { %2967 = vmatmul.mubr.msk.bf16.vlgmr.msra.gmra.mrb[8].mxu1 %vm2966_vm14, %v3769_v21  ;;  %2971 = vmatmul.mubr.msk.bf16.vlgmr.msra.gmra.mrb[12].mxu0 %vm2966_vm14, %v3769_v21  ;;  %v3419_v21 = vld [vmem:[#allocation11 + $0x40] ss:$8 sps:$4 sm:$0xff]  }
 0x590   : > { %2596 = vmatprep.mubr.bf16.mxu0 %v3765_v51  ;;  %2565 = vmatpush1.bf16.msra.mxu0 %v3407_v18  ;;  %v3424_v51 = vld [vmem:[#allocation11 + $0x54] ss:$8 sps:$4 sm:$0xff]   ;;  %v1202_v18 = vadd.f32 %v1196_v16, %v4229_v11 }
 0x591   : > { %2566 = vmatprep.subr.bf16.mxu0 %v3412_v20 }
 0x594   : > { %2567 = vmatpush1.bf16.msra.mxu0 %v3410_v22 }
 0x595   : > { %2568 = vmatprep.subr.bf16.mxu0 %v3415_v23 }
 0x598   : > { %2569 = vmatpush1.bf16.msra.mxu0 %v3413_v24 }
 0x599   : > { %2570 = vmatprep.subr.bf16.mxu0 %v3418_v54 }
 0x59c   : > { %2571 = vmatpush1.bf16.msra.mxu0 %v3416_v4 }
 0x59d   : > { %2572 = vmatprep.subr.bf16.mxu0 %v3421_v25 }
 0x5a0   : > { %2573 = vmatpush1.bf16.msra.mxu0 %v3419_v21  ;;  %v3477_v21 = vld [vmem:[#allocation13] sm:$0xff] }
 0x5a1   : > { %2574 = vmatprep.subr.bf16.mxu0 %v3424_v51 }
 0x5a4   : > { %2575 = vmatpush1.bf16.msra.mxu0 %v3422_v3 }
 0x5a5   : > { %2576 = vmatprep.subr.bf16.mxu0 %v3427_v26 }
 0x5a8   : > { %2577 = vmatpush1.bf16.msra.mxu0 %v3425_v27 }
 0x5a9   : > { %2578 = vmatprep.subr.bf16.mxu0 %v3430_v28 }
 0x5ac   : > { %2579 = vmatpush1.bf16.msra.mxu0 %v3428_v29 }
 0x622   : > { %v2000_v30 = vpop.f32.mrb[4].mxu0  ;;  %v2041_v31 = vpop.f32.mrb[4].mxu1 }
 0x623   : > { %v2002_v32 = vpop.f32.mrb[5].mxu0  ;;  %v4236_v33 = vpop.f32.mrb[5].mxu1 }
 0x624   : > { %v2004_v8 = vpop.f32.mrb[6].mxu0  ;;  %v2045_v34 = vpop.f32.mrb[6].mxu1 }
 0x625   : > { %v2005_v35 = vpop.f32.mrb[7].mxu0  ;;  %v2046_v36 = vpop.f32.mrb[7].mxu1 }
 0x642   : > { %v4238_v37 = vpop.f32.mrb[8].mxu0 }
 0x643   : > { %v3097_v38 = vpop.f32.mrb[9].mxu0 }
 0x644   : > { %v2085_v39 = vpop.f32.mrb[10].mxu0 }
 0x645   : > { %v3098_v40 = vpop.f32.mrb[11].mxu0 }
 0x662   : > { %v2378_v45 = vpop.f32.mrb[8].mxu1  ;;  %v3041_v46 = vpop.f32.mrb[12].mxu0 }
 0x663   : > { %v2379_v49 = vadd.f32 %v2378_v45, %v2000_v30  ;;  %v2380_v50 = vpop.f32.mrb[9].mxu1  ;;  %v3042_v52 = vpop.f32.mrb[13].mxu0 }
 0x664   : > { %v2381_v53 = vadd.f32 %v2380_v50, %v2002_v32  ;;  %v3043_v55 = vadd.f32 %v3042_v52, %v3041_v46  ;;  %v2382_v57 = vpop.f32.mrb[10].mxu1  ;;  %v3044_v58 = vpop.f32.mrb[14].mxu0 }
 0x665   : > { %v2442_v60 = vadd.f32 %v2430_v44, %v2379_v49  ;;  %v2383_v47 = vpop.f32.mrb[11].mxu1  ;;  %v3045_v61 = vpop.f32.mrb[15].mxu0 }
 0x666   : > { %v2443_v1 = vadd.f32 %v2434_v48, %v2381_v53  ;;  %v2420_v2 = vadd.f32 %v3043_v55, %v2041_v31 }
 0x667   : > { %v2445_v6 = vadd.f32 %v2442_v60, %v1200_v59 }
 0x668   : > { %v2452_v5 = vadd.f32 %v2443_v1, %v1201_v0  ;;  %v2444_v20 = vadd.f32 %v2438_v17, %v2420_v2 }
 0x669   : > { %v2972_v7 = vmul.f32 -1.442695, %v2445_v6 }
 0x66a   : > { %v2973_v9 = vmul.f32 -1.442695, %v2452_v5 }
 0x66b   : > { %3467 = vpow2.f32 %v2972_v7 }
 0x66c   : > { %3469 = vpow2.f32 %v2973_v9 }
 0x675   : > { %v3468_v12 = vpop.eup %3467 }
 0x676   : > { %v2449_v14 = vadd.f32 1.0, %v3468_v12  ;;  %v3470_v15 = vpop.eup %3469 }
 0x677   : > { %v2456_v13 = vadd.f32 1.0, %v3470_v15 }
 0x678   : > { %3471 = vrcp.f32 %v2449_v14 }
 0x679   : > { %3473 = vrcp.f32 %v2456_v13 }
 0x682   : > { %v3472_v10 = vpop.eup %3471 }
 0x683   : > { %v2459_v22 = vmul.f32 %v3472_v10, %v1202_v18  ;;  %v3474_v24 = vpop.eup %3473 }
 0x684   : > { %v2462_v54 = vsub.f32 1.0, %v3474_v24  ;;  %v2464_v51 = vmul.f32 %v3477_v21, %v3474_v24 }
 0x685   : > { %v2460_v23 = vadd.f32 %v2459_v22, %v2444_v20 }
 0x687   : > { %3475 = vtanh.f32 %v2460_v23 }
 0x691   : > { %v3476_v4 = vpop.eup %3475 }
 0x692   : > { %v2463_v25 = vmul.f32 %v3476_v4, %v2462_v54 }
 0x694   : > { %v2465_v3 = vadd.f32 %v2464_v51, %v2463_v25 }
 0x696   : > { %v2467_v26 = vpack.c.bf16 %v2465_v3, %v2465_v3  ;;  %2466 = vst [vmem:[#allocation13] sm:$0xff] %v2465_v3 }
 0x698   : > { %2597 = vmatmul.mubr.bf16.vlgmr.msra.gmra.mrb[16].mxu0 %v2467_v26 }
 0x699   : > { %3631 = shalt.err (!%p3628_p5)
}
 0x69a   : > { %s3632_s18 = scalar_lea.hbm %s4385_s15, 128  ;;  %p4437_p9 = pmov %p4436_p4 }
 0x69b   : > { %p3633_p6 = scmp.ne.s32.totalorder %s4385_s15, %s3632_s18  ;;  %p3638_p11 = scmp.lt.u32.totalorder %s3632_s18, %s4385_s15 }
 0x69d   : > { %p3634_p10 = pnand %p3633_p6, %p4437_p9 }
 0x69f   : > { %p3635_p13 = pneg %p3634_p10 }
 0x6a1   : > { %p3640_p0 = pnand %p3638_p11, %p3635_p13 }
 0x6a3   : > { %3643 = shalt.err (!%p3640_p0)
}
 0x6a4   : > { %p4438_p3 = pmov %p4436_p4  ;;  %s4439_s27 = sld [smem:[#allocation30_spill]] }
 0x6a5   : > { %s2621_s16 = sand.u32 1, %s3877_s25   ;;  %s2999_s14 = sshll.u32 %s3877_s25, 8 }
 0x6a6   : > { %3137 = dma.vmem_to_hbm [thread:$0]  (%p4438_p3), %s2653_s4, 128, %s4385_s15, [#allocation14]  }
 0x6a7   : > { %s2641_s13 = sshll.u32 %s4054_s20, 4  ;;  %s4440_s4 = sld [smem:[#allocation25_spill]]  ;;  %s4291_s13 = int_to_ptr.vmem [resolvable:$true] %s2641_s13 }
 0x6a8   : > { %s2995_s18 = sshll.u32 %s3877_s25, 7  ;;  %s2665_s21 = sshll.u32 %s591_s29, 4  ;;  %s4299_s21 = int_to_ptr.vmem [resolvable:$true] %s2665_s21 }
 0x6a9   : > { %s4441_s23 = sld [smem:[#allocation31_spill]]  ;;  %s4302_s19 = scalar_lea.sflag [#allocation5], %s2621_s16 }
 0x6aa   : > { %v2605_v63 = vld [vmem:[%s4439_s27] sm:$0x3]  ;;  %s4443_s27 = sld [smem:[#allocation32_spill]]  ;;  %s3644_s29 = scalar_lea.vmem %s4291_s13, 256 }
 0x6ab   : > { %v2610_v11 = vrot.slane %v2605_v63, %v4103_v19  ;;  %v2614_v28 = vrot.slane %v2605_v63, %v4170_v62  ;;  %p3645_p4 = scmp.ne.s32.totalorder %s4291_s13, %s3644_s29 }
 0x6ad   : > { %p4444_p7 = scmp.ne.s32.totalorder %s4440_s4, 0 }
 0x6af   : > { %s4442_s26 = smov %s4441_s23  ;;  %s4289_s17 = scalar_lea.hbm %s4441_s23, %s2999_s14 }
 0x6b0   : > { %s4297_s1 = scalar_lea.hbm %s4443_s27, %s2995_s18  ;;  %p3646_p8 = pnand %p3645_p4, %p4444_p7 }
 0x6b1   : > { %s3771_s14 = smov [#allocation12]  }
 0x6b2   : > { %p3647_p12 = pneg %p3646_p8  ;;  %s3648_s0 = sshll.u32 %s3771_s14, 4  ;;  %s3649_s0 = int_to_ptr.vmem [resolvable:$false] %s3648_s0 }
 0x6b3   : > { %s3650_s24 = scalar_lea.vmem %s3649_s0, 512  ;;  %p3651_p2 = scmp.lt.s32.totalorder %s4291_s13, %s3649_s0 }
 0x6b4   : > { %p3652_p1 = scmp.lt.s32.totalorder %s3650_s24, %s3644_s29 }
 0x6b6   : > { %p3653_p5 = por %p3652_p1, %p3651_p2 }
 0x6b8   : > { %p3654_p6 = pnand %p3653_p5, %p3647_p12 }
 0x76b   : > { %v2598_v27 = vpop.f32.mrb[16].mxu0 }
 0x76c   : > { %v2599_v29 = vadd.f32 %v2598_v27, %v4236_v33  ;;  %v2600_v30 = vpop.f32.mrb[17].mxu0 }
 0x76d   : > { %v2601_v31 = vadd.f32 %v2600_v30, %v4238_v37  ;;  %v2602_v32 = vpop.f32.mrb[18].mxu0 }
 0x76e   : > { %v2617_v8 = vadd.f32 %v2610_v11, %v2599_v29  ;;  %v2603_v19 = vpop.f32.mrb[19].mxu0 }
 0x76f   : > { %v2618_v34 = vadd.f32 %v2614_v28, %v2601_v31 }
 0x770   : > { %2619 = vst [vmem:[%s4054_s20] sm:$0xff] %v2617_v8 }
 0x771   : > { %2620 = vst [vmem:[%s4054_s20 + $0x8] sm:$0xff] %v2618_v34 }
 0x772   : > { %3657 = shalt.err (!%p3654_p6)
}
 0x773   : > { %s3658_s20 = scalar_lea.hbm %s4289_s17, 256  ;;  %s3662_s23 = scalar_lea.hbm %s4442_s26, 2048 }
 0x774   : > { %p3659_p9 = scmp.ne.s32.totalorder %s4289_s17, %s3658_s20  ;;  %p3663_p11 = scmp.lt.u32.totalorder %s4289_s17, %s4442_s26 }
 0x775   : > { %p3664_p0 = scmp.lt.u32.totalorder %s3662_s23, %s3658_s20  ;;  %p3666_p4 = scmp.lt.u32.totalorder %s3658_s20, %s4289_s17 }
 0x776   : > { %p3660_p10 = pnand %p3659_p9, %p4444_p7 }
 0x777   : > { %p3665_p3 = por %p3664_p0, %p3663_p11 }
 0x778   : > { %p3661_p13 = pneg %p3660_p10 }
 0x779   : > { %p3667_p8 = por %p3666_p4, %p3665_p3 }
 0x77b   : > { %p3668_p12 = pnand %p3667_p8, %p3661_p13 }
 0x77d   : > { %3671 = shalt.err (!%p3668_p12)
}
 0x77e   : > { %3135 = dma.vmem_to_hbm [thread:$0]  (%p4444_p7), %s4291_s13, 256, %s4289_s17, %s4302_s19  }
 0x77f   : > { %s3672_s29 = scalar_lea.vmem %s4299_s21, 128  ;;  %s3772_s14 = smov [#allocation15]  }
 0x780   : > { %p3673_p2 = scmp.ne.s32.totalorder %s4299_s21, %s3672_s29  ;;  %s3676_s0 = sshll.u32 %s3772_s14, 4  ;;  %s3677_s0 = int_to_ptr.vmem [resolvable:$false] %s3676_s0 }
 0x781   : > { %s3678_s24 = scalar_lea.vmem %s3677_s0, 256  ;;  %p3679_p6 = scmp.lt.s32.totalorder %s4299_s21, %s3677_s0 }
 0x782   : > { %p3674_p1 = pnand %p3673_p2, %p4444_p7  ;;  %p3680_p9 = scmp.lt.s32.totalorder %s3678_s24, %s3672_s29 }
 0x784   : > { %p3675_p5 = pneg %p3674_p1  ;;  %p3681_p10 = por %p3680_p9, %p3679_p6 }
 0x786   : > { %p3682_p13 = pnand %p3681_p10, %p3675_p5 }
 0x788   : > { %3685 = shalt.err (!%p3682_p13)
}
 0x789   : > { %s3686_s13 = scalar_lea.hbm %s4297_s1, 128  ;;  %s3690_s16 = scalar_lea.hbm %s4443_s27, 1024 }
 0x78a   : > { %p3687_p11 = scmp.ne.s32.totalorder %s4297_s1, %s3686_s13  ;;  %p3691_p4 = scmp.lt.u32.totalorder %s4297_s1, %s4443_s27 }
 0x78b   : > { %p3692_p8 = scmp.lt.u32.totalorder %s3690_s16, %s3686_s13  ;;  %p3694_p2 = scmp.lt.u32.totalorder %s3686_s13, %s4297_s1 }
 0x78c   : > { %p3688_p0 = pnand %p3687_p11, %p4444_p7 }
 0x78d   : > { %p3693_p12 = por %p3692_p8, %p3691_p4 }
 0x78e   : > { %p3689_p3 = pneg %p3688_p0 }
 0x78f   : > { %p3695_p1 = por %p3694_p2, %p3693_p12 }
 0x791   : > { %p3696_p5 = pnand %p3695_p1, %p3689_p3 }
 0x793   : > { %3699 = shalt.err (!%p3696_p5)
}
 0x794   : > { %3138 = dma.vmem_to_hbm [thread:$0]  (%p4444_p7), %s4299_s21, 128, %s4297_s1, %s4302_s19  }
 0x795   : > { %p4445_p6 = scmp.eq.s32.totalorder %s3877_s25, 7 }
 0x797   : > { %3729 = dma.done.wait (%p4445_p6), [#allocation14], 128   ;;  %p4446_p9 = pmov %p4445_p6 }
 0x799   : > { %3731 = vsyncadd (%p4446_p9), [#allocation14], 4294967168 }
 0x79a PF: > { %s4447_s28 = sld [smem:[#allocation22_spill]]  ;;  %s4448_s30 = sld [smem:[#allocation26_spill]] }
 0x7a0   : > { %p3178_p10 = scmp.ge.s32.totalorder %s4447_s28, 2  ;;  %s4449_s29 = sadd.s32 4294967294, %s4447_s28  }
 0x7a1   : > { %s2681_s14 = sand.u32 1, %s4449_s29   ;;  %p4450_p13 = scmp.ne.s32.totalorder %s4448_s30, 0 }
 0x7a2   : > { %s2682_s4 = scalar_lea.sflag [#allocation5], %s2681_s14 }
 0x7a3   : > { %p3160_p11 = pnand %p3178_p10, %p4450_p13 }
 0x7a5   : > { %3733 = dma.done.wait (!%p3160_p11), %s2682_s4, 384  }
 0x7a6   : > { %3735 = vsyncadd (!%p3160_p11), %s2682_s4, 4294966912  ;;  %s4451_s24 = sld [smem:[#allocation23_spill]]  ;;  %s4452_s1 = sld [smem:[#allocation21_spill]] }
 0x7a7   : > { %s4453_s23 = sld [smem:[#allocation24_spill]]  ;;  %s4454_s21 = smov %s3742_s22 }
 0x7ac   : > { %p31_p7 = scmp.ge.s32.totalorder %s4451_s24, 10   ;;  %s4455_s22 = smov %s4452_s1 }
 0x7ae   :  { %33 = sbr.rel (!%p31_p7) target bundleno = 14 (0xe), region = 159 }
 0x7b5   :  { %2696 = vsyncpa [#allocation4], 1 }
 0x7b6   :  { %2698 = vsyncpa [#allocation4 + $0x1], 1 }
 0x7b7   :  { %2699 = vsyncpa [#allocation7], 1 }
 0x7b8   :  { %2700 = vsyncpa [#allocation10], 1 }
 0x7b9   :  { %2701 = vsyncpa [#allocation5], 1 }
 0x7ba   :  { %2703 = vsyncpa [#allocation5 + $0x1], 1 }
 0x7bb   :  { %2704 = vsyncpa [#allocation14], 1 }

</bundles_post_ra>
